<compile_context>
chip_gen: v7x
topology: tpu7x:2x2x1
jax: 0.10.0
libtpu: 0.0.40
codegen_flags: <defaults>
</compile_context>

<pallas_src>
import numpy as np
import jax
import jax.numpy as jnp
from jax.experimental import pallas as pl
from jax.experimental.pallas import tpu as pltpu


def _round_up(x, m):
    return ((x + m - 1) // m) * m


# ---------------------------------------------------------------------------
# Kernel: per row-tile LayerNorm + 5x (matmul [+bias] [+ReLU]) with BN folded.
# ---------------------------------------------------------------------------
def _ffn_kernel(x_ref,
                w1, b1, w2, b2, w3, b3, w4, b4, w5, b5,
                o_ref):
    x = x_ref[...].astype(jnp.float32)

    # LayerNorm over the feature (lane) axis; eps=0 exactly matches
    # nn.LayerNorm(resnet_out, elementwise_affine=False, eps=0).
    mu = jnp.mean(x, axis=-1, keepdims=True)
    var = jnp.mean(x * x, axis=-1, keepdims=True) - mu * mu      # one-pass variance
    h = (x - mu) * jax.lax.rsqrt(var)

    def lin_relu(h, w_ref, b_ref):
        # bf16 operands, f32 accumulation on the MXU; BN already folded into w/b.
        z = jnp.dot(h.astype(jnp.bfloat16), w_ref[...],
                    preferred_element_type=jnp.float32) + b_ref[...]
        return jnp.maximum(z, 0.0)

    h = lin_relu(h, w1, b1)
    h = lin_relu(h, w2, b2)
    h = lin_relu(h, w3, b3)
    h = lin_relu(h, w4, b4)

    y = jnp.dot(h.astype(jnp.bfloat16), w5[...],
                preferred_element_type=jnp.float32) + b5[...]
    o_ref[...] = y.astype(o_ref.dtype)


# ---------------------------------------------------------------------------
# Wrapper: row-tiled pallas_call over the flattened (sample, timestep) rows.
# ---------------------------------------------------------------------------
def positionalwise_ffn(x_cat, folded_params, ln_out, *, block_rows=512,
                       vmem_limit_bytes=None):
    """x_cat: [N, resnet_out] float32. Returns y: [N, ln_out] float32."""
    n, d = x_cat.shape
    out_pad = folded_params[-1].shape[-1]        # lane-padded output width (>= ln_out)

    # Row tile: as large as reasonable (MXU fill), multiple of 128, but no
    # larger than the padded problem. Large N -> several grid steps (v7x 2 TCs).
    block = min(block_rows, _round_up(max(n, 1), 128))
    n_pad = _round_up(n, block)

    if n_pad > n:
        # Padding rows: non-constant pattern so LayerNorm variance != 0 (no
        # 0*inf NaN noise); padded outputs are sliced off below anyway.
        pad = jnp.broadcast_to(
            jnp.arange(d, dtype=x_cat.dtype)[None, :], (n_pad - n, d))
        x_pad = jnp.concatenate([x_cat, pad], axis=0)
    else:
        x_pad = x_cat

    grid = (n_pad // block,)
    row_map = lambda i: (i, 0)
    const_map = lambda i: (0, 0)                 # weights fully VMEM-resident

    in_specs = [pl.BlockSpec((block, d), row_map)]
    in_specs += [pl.BlockSpec(p.shape, const_map) for p in folded_params]
    out_spec = pl.BlockSpec((block, out_pad), row_map)

    cp_kwargs = dict(dimension_semantics=("parallel",))
    if vmem_limit_bytes is not None:   # e.g. for very large tiles on v5e (16 MiB default)
        cp_kwargs["vmem_limit_bytes"] = vmem_limit_bytes

    y_pad = pl.pallas_call(
        _ffn_kernel,
        out_shape=jax.ShapeDtypeStruct((n_pad, out_pad), jnp.float32),
        grid_spec=pltpu.PrefetchScalarGridSpec(
            num_scalar_prefetch=0,
            grid=grid,
            in_specs=in_specs,
            out_specs=out_spec,
        ),
        compiler_params=pltpu.CompilerParams(**cp_kwargs),
    )(x_pad, *folded_params)

    return y_pad[:n, :ln_out]


# ---------------------------------------------------------------------------
# Host-side param prep: synthetic torch-like init, BN folding, lane padding,
# bf16 weight cast.
# ---------------------------------------------------------------------------
def init_torch_like_params(key, resnet_out, ln_out):
    """Synthetic Linear + BatchNorm1d(eval) parameters ([in, out] weight layout)."""
    dims = [resnet_out, resnet_out, 512, 256, 64, ln_out]
    linears, bns = [], []
    for li in range(5):
        d_in, d_out = dims[li], dims[li + 1]
        key, kw, kb = jax.random.split(key, 3)
        bound = 1.0 / np.sqrt(d_in)
        w = jax.random.uniform(kw, (d_in, d_out), jnp.float32, -bound, bound)
        b = jax.random.uniform(kb, (1, d_out), jnp.float32, -bound, bound)
        linears.append((w, b))
        if li < 4:
            key, kg, kbt, km, kv = jax.random.split(key, 5)
            gamma = jax.random.uniform(kg, (1, d_out), jnp.float32, 0.5, 1.5)
            beta = 0.1 * jax.random.normal(kbt, (1, d_out), jnp.float32)
            r_mean = 0.1 * jax.random.normal(km, (1, d_out), jnp.float32)
            r_var = jax.random.uniform(kv, (1, d_out), jnp.float32, 0.5, 1.5)
            bns.append((gamma, beta, r_mean, r_var))
    return linears, bns


def fold_and_pack_params(linears, bns, *, bn_eps=1e-5, lane=128):
    """Fold eval-mode BatchNorm into the NEXT Linear, zero-pad narrow feature
    dims up to `lane`, cast weights to bf16 (biases stay f32)."""
    # BN(eval) per-feature affine: z -> z * s + t
    scales, shifts = [], []
    for gamma, beta, r_mean, r_var in bns:
        s = gamma / jnp.sqrt(r_var + bn_eps)
        t = beta - r_mean * s
        scales.append(s)
        shifts.append(t)

    folded_w, folded_b = [], []
    for li, (w, b) in enumerate(linears):
        if li > 0:
            s, t = scales[li - 1], shifts[li - 1]
            b = b + t @ w                 # uses the ORIGINAL w
            w = w * s.reshape(-1, 1)      # absorb BN scale into input rows
        folded_w.append(w)
        folded_b.append(b)

    # Zero-pad the 64-wide hidden (layer-4 out / layer-5 in) and ln_out to 128.
    d4 = folded_w[3].shape[1]
    d4p = _round_up(d4, lane)
    if d4p > d4:
        folded_w[3] = jnp.pad(folded_w[3], ((0, 0), (0, d4p - d4)))
        folded_b[3] = jnp.pad(folded_b[3], ((0, 0), (0, d4p - d4)))
        folded_w[4] = jnp.pad(folded_w[4], ((0, d4p - d4), (0, 0)))
    dout = folded_w[4].shape[1]
    doutp = _round_up(dout, lane)
    if doutp > dout:
        folded_w[4] = jnp.pad(folded_w[4], ((0, 0), (0, doutp - dout)))
        folded_b[4] = jnp.pad(folded_b[4], ((0, 0), (0, doutp - dout)))

    params = []
    for w, b in zip(folded_w, folded_b):
        params += [w.astype(jnp.bfloat16), b.astype(jnp.float32)]
    return tuple(params)


# ---------------------------------------------------------------------------
# Glue + references
# ---------------------------------------------------------------------------
def ragged_concat(x, valid_len):
    """torch: cat([x[i][:valid_len[i]] for i in range(B)], dim=0). Static glue."""
    # TODO(synk): for large N, fuse this gather into the kernel via
    # PrefetchScalarGridSpec(num_scalar_prefetch=1) + a pl.Element row BlockSpec.
    b, max_len, d = x.shape
    idx = np.concatenate(
        [i * max_len + np.arange(int(l)) for i, l in enumerate(valid_len)])
    return x.reshape(b * max_len, d)[jnp.asarray(idx)]


def reference_bf16(x_cat, folded_params, ln_out):
    """Same arithmetic as the kernel (bf16 operands, f32 accumulation)."""
    ws = folded_params[0::2]
    bs = folded_params[1::2]
    x = x_cat.astype(jnp.float32)
    mu = jnp.mean(x, axis=-1, keepdims=True)
    var = jnp.mean(x * x, axis=-1, keepdims=True) - mu * mu
    h = (x - mu) * jax.lax.rsqrt(var)
    for i in range(4):
        h = jnp.maximum(
            jnp.dot(h.astype(jnp.bfloat16), ws[i],
                    preferred_element_type=jnp.float32) + bs[i], 0.0)
    y = jnp.dot(h.astype(jnp.bfloat16), ws[4],
                preferred_element_type=jnp.float32) + bs[4]
    return y[:, :ln_out]


def reference_f32(x_cat, linears, bns, *, bn_eps=1e-5):
    """Original (unfolded, full f32) eval-mode semantics of the module."""
    x = x_cat.astype(jnp.float32)
    mu = jnp.mean(x, axis=-1, keepdims=True)
    var = jnp.mean((x - mu) ** 2, axis=-1, keepdims=True)
    h = (x - mu) / jnp.sqrt(var)          # eps = 0, as in the module
    for li, (w, b) in enumerate(linears):
        h = h @ w + b
        if li < 4:
            gamma, beta, r_mean, r_var = bns[li]
            h = jnp.maximum(h, 0.0)
            h = (h - r_mean) / jnp.sqrt(r_var + bn_eps) * gamma + beta
    return h


if __name__ == "__main__":
    batch = 4
    max_len = 8
    resnet_out = 128
    ln_out = 8
    valid_len = [8, 5, 3, 6]   # per-sample valid lengths (<= max_len)

    key = jax.random.PRNGKey(0)
    key, kx = jax.random.split(key)
    x = jax.random.normal(kx, (batch, max_len, resnet_out), jnp.float32)

    linears, bns = init_torch_like_params(key, resnet_out, ln_out)
    folded_params = fold_and_pack_params(linears, bns)

    # 1. ragged prefix concat (static indices; returned like the module's x)
    x_cat = ragged_concat(x, valid_len)                  # [N, resnet_out], N = 22

    # 2./3. LayerNorm + BN-folded MLP hot path in the Pallas kernel
    y = positionalwise_ffn(x_cat, folded_params, ln_out)
    x_cat, y = jax.block_until_ready((x_cat, y))

    assert y.shape == (sum(valid_len), ln_out)

    # Tight check against a reference using the exact same bf16/f32 arithmetic.
    y_ref = reference_bf16(x_cat, folded_params, ln_out)
    np.testing.assert_allclose(np.asarray(y), np.asarray(y_ref),
                               rtol=2e-3, atol=2e-3)

    # Loose check against the original unfolded full-f32 semantics
    # (difference = bf16 weight/activation rounding only).
    y_f32 = reference_f32(x_cat, linears, bns)
    np.testing.assert_allclose(np.asarray(y), np.asarray(y_f32),
                               rtol=5e-2, atol=5e-2)

    print("KERNEL_OK")
</pallas_src>

<mosaic_0001>
module attributes {stable_mosaic.version = 11 : i64} {
  func.func @_ffn_kernel(%arg0: i32, %arg1: memref<128x128xf32, #tpu.memory_space<vmem>>, %arg2: memref<128x128xbf16, #tpu.memory_space<vmem>>, %arg3: memref<1x128xf32, #tpu.memory_space<vmem>>, %arg4: memref<128x512xbf16, #tpu.memory_space<vmem>>, %arg5: memref<1x512xf32, #tpu.memory_space<vmem>>, %arg6: memref<512x256xbf16, #tpu.memory_space<vmem>>, %arg7: memref<1x256xf32, #tpu.memory_space<vmem>>, %arg8: memref<256x128xbf16, #tpu.memory_space<vmem>>, %arg9: memref<1x128xf32, #tpu.memory_space<vmem>>, %arg10: memref<128x128xbf16, #tpu.memory_space<vmem>>, %arg11: memref<1x128xf32, #tpu.memory_space<vmem>>, %arg12: memref<128x128xf32, #tpu.memory_space<vmem>>) attributes {dimension_semantics = [#tpu.dimension_semantics<parallel>], iteration_bounds = array<i64: 1>, scalar_prefetch = 0 : i64, scratch_operands = 0 : i64, tpu.core_type = #tpu.core_type<tc>, window_params = [{transform_indices = @transform_0, window_bounds = array<i64: 128, 128>}, {pipeline_mode = #tpu.pipeline_mode<synchronous>, transform_indices = @transform_1, window_bounds = array<i64: 128, 128>}, {pipeline_mode = #tpu.pipeline_mode<synchronous>, transform_indices = @transform_2, window_bounds = array<i64: 1, 128>}, {pipeline_mode = #tpu.pipeline_mode<synchronous>, transform_indices = @transform_3, window_bounds = array<i64: 128, 512>}, {pipeline_mode = #tpu.pipeline_mode<synchronous>, transform_indices = @transform_4, window_bounds = array<i64: 1, 512>}, {pipeline_mode = #tpu.pipeline_mode<synchronous>, transform_indices = @transform_5, window_bounds = array<i64: 512, 256>}, {pipeline_mode = #tpu.pipeline_mode<synchronous>, transform_indices = @transform_6, window_bounds = array<i64: 1, 256>}, {pipeline_mode = #tpu.pipeline_mode<synchronous>, transform_indices = @transform_7, window_bounds = array<i64: 256, 128>}, {pipeline_mode = #tpu.pipeline_mode<synchronous>, transform_indices = @transform_8, window_bounds = array<i64: 1, 128>}, {pipeline_mode = #tpu.pipeline_mode<synchronous>, transform_indices = @transform_9, window_bounds = array<i64: 128, 128>}, {pipeline_mode = #tpu.pipeline_mode<synchronous>, transform_indices = @transform_10, window_bounds = array<i64: 1, 128>}, {transform_indices = @transform_11, window_bounds = array<i64: 128, 128>}]} {
    %c0 = arith.constant 0 : index
    %c0_0 = arith.constant 0 : index
    %0 = vector.load %arg1[%c0, %c0_0] : memref<128x128xf32, #tpu.memory_space<vmem>>, vector<128x128xf32>
    %cst = arith.constant dense<0.000000e+00> : vector<128xf32>
    %1 = vector.multi_reduction <add>, %0, %cst [1] : vector<128x128xf32> to vector<128xf32>
    %2 = vector.shape_cast %1 : vector<128xf32> to vector<128x1xf32>
    %cst_1 = arith.constant 1.280000e+02 : f32
    %3 = vector.broadcast %cst_1 : f32 to vector<128x1xf32>
    %4 = arith.divf %2, %3 : vector<128x1xf32>
    %5 = arith.mulf %0, %0 : vector<128x128xf32>
    %cst_2 = arith.constant dense<0.000000e+00> : vector<128xf32>
    %6 = vector.multi_reduction <add>, %5, %cst_2 [1] : vector<128x128xf32> to vector<128xf32>
    %7 = vector.shape_cast %6 : vector<128xf32> to vector<128x1xf32>
    %cst_3 = arith.constant 1.280000e+02 : f32
    %8 = vector.broadcast %cst_3 : f32 to vector<128x1xf32>
    %9 = arith.divf %7, %8 : vector<128x1xf32>
    %10 = arith.mulf %4, %4 : vector<128x1xf32>
    %11 = arith.subf %9, %10 : vector<128x1xf32>
    %12 = vector.broadcast %4 : vector<128x1xf32> to vector<128x128xf32>
    %13 = arith.subf %0, %12 : vector<128x128xf32>
    %14 = math.rsqrt %11 : vector<128x1xf32>
    %15 = vector.broadcast %14 : vector<128x1xf32> to vector<128x128xf32>
    %16 = arith.mulf %13, %15 : vector<128x128xf32>
    %17 = arith.truncf %16 : vector<128x128xf32> to vector<128x128xbf16>
    %c0_4 = arith.constant 0 : index
    %c0_5 = arith.constant 0 : index
    %18 = vector.load %arg2[%c0_4, %c0_5] : memref<128x128xbf16, #tpu.memory_space<vmem>>, vector<128x128xbf16>
    %cst_6 = arith.constant dense<0.000000e+00> : vector<128x128xf32>
    %19 = tpu.matmul %17, %18, %cst_6 {dimension_numbers = #tpu.dot_dimension_numbers<[1], [0], [0], [1], [0, 0, 1, 1], [], []>} : vector<128x128xbf16>, vector<128x128xbf16>, vector<128x128xf32> -> vector<128x128xf32>
    %c0_7 = arith.constant 0 : index
    %c0_8 = arith.constant 0 : index
    %20 = vector.load %arg3[%c0_7, %c0_8] : memref<1x128xf32, #tpu.memory_space<vmem>>, vector<1x128xf32>
    %21 = vector.broadcast %20 : vector<1x128xf32> to vector<128x128xf32>
    %22 = arith.addf %19, %21 : vector<128x128xf32>
    %cst_9 = arith.constant 0.000000e+00 : f32
    %23 = vector.broadcast %cst_9 : f32 to vector<128x128xf32>
    %24 = arith.maximumf %22, %23 : vector<128x128xf32>
    %25 = arith.truncf %24 : vector<128x128xf32> to vector<128x128xbf16>
    %c0_10 = arith.constant 0 : index
    %c0_11 = arith.constant 0 : index
    %26 = vector.load %arg4[%c0_10, %c0_11] : memref<128x512xbf16, #tpu.memory_space<vmem>>, vector<128x512xbf16>
    %cst_12 = arith.constant dense<0.000000e+00> : vector<128x512xf32>
    %27 = tpu.matmul %25, %26, %cst_12 {dimension_numbers = #tpu.dot_dimension_numbers<[1], [0], [0], [1], [0, 0, 1, 1], [], []>} : vector<128x128xbf16>, vector<128x512xbf16>, vector<128x512xf32> -> vector<128x512xf32>
    %c0_13 = arith.constant 0 : index
    %c0_14 = arith.constant 0 : index
    %28 = vector.load %arg5[%c0_13, %c0_14] : memref<1x512xf32, #tpu.memory_space<vmem>>, vector<1x512xf32>
    %29 = vector.broadcast %28 : vector<1x512xf32> to vector<128x512xf32>
    %30 = arith.addf %27, %29 : vector<128x512xf32>
    %cst_15 = arith.constant 0.000000e+00 : f32
    %31 = vector.broadcast %cst_15 : f32 to vector<128x512xf32>
    %32 = arith.maximumf %30, %31 : vector<128x512xf32>
    %33 = arith.truncf %32 : vector<128x512xf32> to vector<128x512xbf16>
    %c0_16 = arith.constant 0 : index
    %c0_17 = arith.constant 0 : index
    %34 = vector.load %arg6[%c0_16, %c0_17] : memref<512x256xbf16, #tpu.memory_space<vmem>>, vector<512x256xbf16>
    %cst_18 = arith.constant dense<0.000000e+00> : vector<128x256xf32>
    %35 = tpu.matmul %33, %34, %cst_18 {dimension_numbers = #tpu.dot_dimension_numbers<[1], [0], [0], [1], [0, 0, 1, 1], [], []>} : vector<128x512xbf16>, vector<512x256xbf16>, vector<128x256xf32> -> vector<128x256xf32>
    %c0_19 = arith.constant 0 : index
    %c0_20 = arith.constant 0 : index
    %36 = vector.load %arg7[%c0_19, %c0_20] : memref<1x256xf32, #tpu.memory_space<vmem>>, vector<1x256xf32>
    %37 = vector.broadcast %36 : vector<1x256xf32> to vector<128x256xf32>
    %38 = arith.addf %35, %37 : vector<128x256xf32>
    %cst_21 = arith.constant 0.000000e+00 : f32
    %39 = vector.broadcast %cst_21 : f32 to vector<128x256xf32>
    %40 = arith.maximumf %38, %39 : vector<128x256xf32>
    %41 = arith.truncf %40 : vector<128x256xf32> to vector<128x256xbf16>
    %c0_22 = arith.constant 0 : index
    %c0_23 = arith.constant 0 : index
    %42 = vector.load %arg8[%c0_22, %c0_23] : memref<256x128xbf16, #tpu.memory_space<vmem>>, vector<256x128xbf16>
    %cst_24 = arith.constant dense<0.000000e+00> : vector<128x128xf32>
    %43 = tpu.matmul %41, %42, %cst_24 {dimension_numbers = #tpu.dot_dimension_numbers<[1], [0], [0], [1], [0, 0, 1, 1], [], []>} : vector<128x256xbf16>, vector<256x128xbf16>, vector<128x128xf32> -> vector<128x128xf32>
    %c0_25 = arith.constant 0 : index
    %c0_26 = arith.constant 0 : index
    %44 = vector.load %arg9[%c0_25, %c0_26] : memref<1x128xf32, #tpu.memory_space<vmem>>, vector<1x128xf32>
    %45 = vector.broadcast %44 : vector<1x128xf32> to vector<128x128xf32>
    %46 = arith.addf %43, %45 : vector<128x128xf32>
    %cst_27 = arith.constant 0.000000e+00 : f32
    %47 = vector.broadcast %cst_27 : f32 to vector<128x128xf32>
    %48 = arith.maximumf %46, %47 : vector<128x128xf32>
    %49 = arith.truncf %48 : vector<128x128xf32> to vector<128x128xbf16>
    %c0_28 = arith.constant 0 : index
    %c0_29 = arith.constant 0 : index
    %50 = vector.load %arg10[%c0_28, %c0_29] : memref<128x128xbf16, #tpu.memory_space<vmem>>, vector<128x128xbf16>
    %cst_30 = arith.constant dense<0.000000e+00> : vector<128x128xf32>
    %51 = tpu.matmul %49, %50, %cst_30 {dimension_numbers = #tpu.dot_dimension_numbers<[1], [0], [0], [1], [0, 0, 1, 1], [], []>} : vector<128x128xbf16>, vector<128x128xbf16>, vector<128x128xf32> -> vector<128x128xf32>
    %c0_31 = arith.constant 0 : index
    %c0_32 = arith.constant 0 : index
    %52 = vector.load %arg11[%c0_31, %c0_32] : memref<1x128xf32, #tpu.memory_space<vmem>>, vector<1x128xf32>
    %53 = vector.broadcast %52 : vector<1x128xf32> to vector<128x128xf32>
    %54 = arith.addf %51, %53 : vector<128x128xf32>
    %c0_33 = arith.constant 0 : index
    %c0_34 = arith.constant 0 : index
    %55 = vector.load %arg12[%c0_33, %c0_34] : memref<128x128xf32, #tpu.memory_space<vmem>>, vector<128x128xf32>
    tpu.vector_store %arg12[%c0_33, %c0_34], %54 {strides = array<i32>} : memref<128x128xf32, #tpu.memory_space<vmem>>, vector<128x128xf32>,
    return
  }
  func.func @transform_0(%arg0: i32) -> (i32, i32) {
    %c0_i32 = arith.constant 0 : i32
    %c0_i32_0 = arith.constant 0 : i32
    return %arg0, %c0_i32 : i32, i32
  }
  func.func @transform_1(%arg0: i32) -> (i32, i32) {
    %c0_i32 = arith.constant 0 : i32
    %c0_i32_0 = arith.constant 0 : i32
    %c0_i32_1 = arith.constant 0 : i32
    return %c0_i32, %c0_i32_0 : i32, i32
  }
  func.func @transform_2(%arg0: i32) -> (i32, i32) {
    %c0_i32 = arith.constant 0 : i32
    %c0_i32_0 = arith.constant 0 : i32
    %c0_i32_1 = arith.constant 0 : i32
    return %c0_i32, %c0_i32_0 : i32, i32
  }
  func.func @transform_3(%arg0: i32) -> (i32, i32) {
    %c0_i32 = arith.constant 0 : i32
    %c0_i32_0 = arith.constant 0 : i32
    %c0_i32_1 = arith.constant 0 : i32
    return %c0_i32, %c0_i32_0 : i32, i32
  }
  func.func @transform_4(%arg0: i32) -> (i32, i32) {
    %c0_i32 = arith.constant 0 : i32
    %c0_i32_0 = arith.constant 0 : i32
    %c0_i32_1 = arith.constant 0 : i32
    return %c0_i32, %c0_i32_0 : i32, i32
  }
  func.func @transform_5(%arg0: i32) -> (i32, i32) {
    %c0_i32 = arith.constant 0 : i32
    %c0_i32_0 = arith.constant 0 : i32
    %c0_i32_1 = arith.constant 0 : i32
    return %c0_i32, %c0_i32_0 : i32, i32
  }
  func.func @transform_6(%arg0: i32) -> (i32, i32) {
    %c0_i32 = arith.constant 0 : i32
    %c0_i32_0 = arith.constant 0 : i32
    %c0_i32_1 = arith.constant 0 : i32
    return %c0_i32, %c0_i32_0 : i32, i32
  }
  func.func @transform_7(%arg0: i32) -> (i32, i32) {
    %c0_i32 = arith.constant 0 : i32
    %c0_i32_0 = arith.constant 0 : i32
    %c0_i32_1 = arith.constant 0 : i32
    return %c0_i32, %c0_i32_0 : i32, i32
  }
  func.func @transform_8(%arg0: i32) -> (i32, i32) {
    %c0_i32 = arith.constant 0 : i32
    %c0_i32_0 = arith.constant 0 : i32
    %c0_i32_1 = arith.constant 0 : i32
    return %c0_i32, %c0_i32_0 : i32, i32
  }
  func.func @transform_9(%arg0: i32) -> (i32, i32) {
    %c0_i32 = arith.constant 0 : i32
    %c0_i32_0 = arith.constant 0 : i32
    %c0_i32_1 = arith.constant 0 : i32
    return %c0_i32, %c0_i32_0 : i32, i32
  }
  func.func @transform_10(%arg0: i32) -> (i32, i32) {
    %c0_i32 = arith.constant 0 : i32
    %c0_i32_0 = arith.constant 0 : i32
    %c0_i32_1 = arith.constant 0 : i32
    return %c0_i32, %c0_i32_0 : i32, i32
  }
  func.func @transform_11(%arg0: i32) -> (i32, i32) {
    %c0_i32 = arith.constant 0 : i32
    %c0_i32_0 = arith.constant 0 : i32
    return %arg0, %c0_i32 : i32, i32
  }
}

</mosaic_0001>

<bundles_post_ra>
// kernel: tpu_custom_call.1
= control target key start
LH: loop header
LB: loop body
LE: loop exit
PB: predicated region body
PF: predicated region fallthrough
CT: control target
= control target key end

     0   :  { %16 = vsyncpa [#allocation3], 0  ;;  %s3485_s0 = inlined_call_operand.hbm [shape: f32[128,128], index: 0, kind: input, shape index: {}]   ;;  %s3486_s1 = inlined_call_operand.hbm [shape: bf16[128,128], index: 1, kind: input, shape index: {}]   ;;  %s3487_s2 = inlined_call_operand.vmem [shape: f32[1,128], index: 2, kind: input, shape index: {}]   ;;  %s3488_s3 = inlined_call_operand.hbm [shape: bf16[128,512], index: 3, kind: input, shape index: {}]   ;;  %s3489_s4 = inlined_call_operand.vmem [shape: f32[1,512], index: 4, kind: input, shape index: {}]   ;;  %s3490_s5 = inlined_call_operand.hbm [shape: bf16[512,256], index: 5, kind: input, shape index: {}]   ;;  %s3491_s6 = inlined_call_operand.vmem [shape: f32[1,256], index: 6, kind: input, shape index: {}]   ;;  %s3492_s7 = inlined_call_operand.hbm [shape: bf16[256,128], index: 7, kind: input, shape index: {}]   ;;  %s3493_s8 = inlined_call_operand.vmem [shape: f32[1,128], index: 8, kind: input, shape index: {}]   ;;  %s3494_s9 = inlined_call_operand.hbm [shape: bf16[128,128], index: 9, kind: input, shape index: {}]   ;;  %s3495_s10 = inlined_call_operand.vmem [shape: f32[1,128], index: 10, kind: input, shape index: {}]   ;;  %s3496_s11 = inlined_call_operand.hbm [shape: f32[128,128], index: 11, kind: output, shape index: {}]  }
   0x1   :  { %17 = vsyncpa [#allocation6], 0 }
   0x2   :  { %18 = vsyncpa [#allocation9], 0 }
   0x3   :  { %19 = vsyncpa [#allocation12], 0 }
   0x4   :  { %20 = vsyncpa [#allocation4], 0  ;;  %s2938_s17 = smov [#allocation5]   ;;  %s2774_s21 = scalar_lea.hbm %s3486_s1, 1024 }
   0x5   :  { %s38_s18 = sshll.u32 %s2938_s17, 4  ;;  %p2775_p0 = scmp.ne.s32.totalorder %s3486_s1, %s2774_s21  ;;  %s39_s18 = int_to_ptr.vmem [resolvable:$true] %s38_s18 }
   0x6   :  { %p2778_p1 = scmp.lt.u32.totalorder %s2774_s21, %s3486_s1 }
   0x8   :  { %p2780_p2 = pnand %p2778_p1, %p2775_p0 }
   0xa   :  { %2783 = shalt.err (!%p2780_p2)
}
   0xb   :  { %s2784_s26 = scalar_lea.vmem %s39_s18, 1024  ;;  %p2789_p4 = scmp.lt.s32.totalorder %s39_s18, %s39_s18 }
   0xc   :  { %p2785_p3 = scmp.ne.s32.totalorder %s39_s18, %s2784_s26  ;;  %p2790_p5 = scmp.lt.s32.totalorder %s2784_s26, %s2784_s26 }
   0xe   :  { %p2791_p6 = por %p2790_p5, %p2789_p4 }
  0x10   :  { %p2792_p7 = pnand %p2791_p6, %p2785_p3 }
  0x12   :  { %2795 = shalt.err (!%p2792_p7)
}
  0x13   :  { %s2939_s27 = smov 64   ;;  %s2940_s28 = smov 4  }
  0x14   :  { %44 = dma.hbm_to_vmem [thread:$0]  %s3486_s1, 1024, %s39_s18, [#allocation6], %s2939_s27, %s2939_s27, %s2940_s28  }
  0x15   :  { %s2941_s12 = smov [#allocation8]   ;;  %s2942_s14 = smov [#allocation2]  }
  0x16   :  { %s66_s13 = sshll.u32 %s2941_s12, 4  ;;  %s26_s15 = sshll.u32 %s2942_s14, 4  ;;  %s67_s13 = int_to_ptr.vmem [resolvable:$true] %s66_s13  ;;  %s27_s15 = int_to_ptr.vmem [resolvable:$true] %s26_s15 }
  0x17   :  { %s2796_s19 = scalar_lea.hbm %s3490_s5, 8192 }
  0x18   :  { %p2797_p8 = scmp.ne.s32.totalorder %s3490_s5, %s2796_s19  ;;  %p2800_p9 = scmp.lt.u32.totalorder %s2796_s19, %s3490_s5 }
  0x1a   :  { %p2802_p10 = pnand %p2800_p9, %p2797_p8 }
  0x1c   :  { %2805 = shalt.err (!%p2802_p10)
}
  0x1d   :  { %s2806_s1 = scalar_lea.vmem %s67_s13, 8192  ;;  %p2811_p12 = scmp.lt.s32.totalorder %s67_s13, %s67_s13 }
  0x1e   :  { %p2807_p11 = scmp.ne.s32.totalorder %s67_s13, %s2806_s1  ;;  %p2812_p13 = scmp.lt.s32.totalorder %s2806_s1, %s2806_s1 }
  0x20   :  { %p2813_p0 = por %p2812_p13, %p2811_p12 }
  0x22   :  { %p2814_p1 = pnand %p2813_p0, %p2807_p11 }
  0x24   :  { %2817 = shalt.err (!%p2814_p1)
}
  0x25   :  { %s2943_s18 = smov 128   ;;  %s2944_s24 = smov 8  }
  0x26   :  { %72 = dma.hbm_to_vmem [thread:$0]  %s3490_s5, 8192, %s67_s13, [#allocation9], %s2943_s18, %s2943_s18, %s2944_s24  }
  0x27   :  { %s2818_s12 = scalar_lea.hbm %s3485_s0, 2048 }
  0x28   :  { %p2819_p2 = scmp.ne.s32.totalorder %s3485_s0, %s2818_s12  ;;  %p2822_p3 = scmp.lt.u32.totalorder %s2818_s12, %s3485_s0 }
  0x2a   :  { %p2824_p4 = pnand %p2822_p3, %p2819_p2 }
  0x2c   :  { %2827 = shalt.err (!%p2824_p4)
}
  0x2d   :  { %s2828_s20 = scalar_lea.vmem %s27_s15, 2048  ;;  %p2833_p6 = scmp.lt.s32.totalorder %s27_s15, %s27_s15 }
  0x2e   :  { %p2829_p5 = scmp.ne.s32.totalorder %s27_s15, %s2828_s20  ;;  %p2834_p7 = scmp.lt.s32.totalorder %s2828_s20, %s2828_s20 }
  0x30   :  { %p2835_p8 = por %p2834_p7, %p2833_p6 }
  0x32   :  { %p2836_p9 = pnand %p2835_p8, %p2829_p5 }
  0x34   :  { %2839 = shalt.err (!%p2836_p9)
}
  0x35   :  { %32 = dma.hbm_to_vmem [thread:$0]  %s3485_s0, 2048, %s27_s15, [#allocation3], %s2943_s18, %s2943_s18, %s2944_s24  }
  0x36   :  { %s2945_s21 = smov [#allocation7]   ;;  %s2840_s25 = scalar_lea.hbm %s3488_s3, 4096 }
  0x37   :  { %s52_s22 = sshll.u32 %s2945_s21, 4  ;;  %p2841_p10 = scmp.ne.s32.totalorder %s3488_s3, %s2840_s25  ;;  %s53_s22 = int_to_ptr.vmem [resolvable:$true] %s52_s22 }
  0x38   :  { %p2844_p11 = scmp.lt.u32.totalorder %s2840_s25, %s3488_s3 }
  0x3a   :  { %p2846_p12 = pnand %p2844_p11, %p2841_p10 }
  0x3c   :  { %2849 = shalt.err (!%p2846_p12)
}
  0x3d   :  { %s2850_s14 = scalar_lea.vmem %s53_s22, 4096  ;;  %p2855_p0 = scmp.lt.s32.totalorder %s53_s22, %s53_s22 }
  0x3e   :  { %p2851_p13 = scmp.ne.s32.totalorder %s53_s22, %s2850_s14  ;;  %p2856_p1 = scmp.lt.s32.totalorder %s2850_s14, %s2850_s14 }
  0x40   :  { %p2857_p2 = por %p2856_p1, %p2855_p0 }
  0x42   :  { %p2858_p3 = pnand %p2857_p2, %p2851_p13 }
  0x44   :  { %2861 = shalt.err (!%p2858_p3)
}
  0x45   :  { %s2946_s0 = smov 256   ;;  %s2947_s15 = smov 16  }
  0x46   :  { %58 = dma.hbm_to_vmem [thread:$0]  %s3488_s3, 4096, %s53_s22, [#allocation6], %s2946_s0, %s2946_s0, %s2947_s15  }
  0x47   :  { %s2948_s19 = smov [#allocation10]   ;;  %s2949_s5 = smov [#allocation11]  }
  0x48   :  { %s80_s20 = sshll.u32 %s2948_s19, 4  ;;  %s94_s13 = sshll.u32 %s2949_s5, 4  ;;  %s81_s20 = int_to_ptr.vmem [resolvable:$true] %s80_s20  ;;  %s3069_s13 = int_to_ptr.vmem [resolvable:$true] %s94_s13 }
  0x49   :  { %s2862_s1 = scalar_lea.hbm %s3492_s7, 2048 }
  0x4a   :  { %p2863_p4 = scmp.ne.s32.totalorder %s3492_s7, %s2862_s1  ;;  %p2866_p5 = scmp.lt.u32.totalorder %s2862_s1, %s3492_s7 }
  0x4c   :  { %p2868_p6 = pnand %p2866_p5, %p2863_p4 }
  0x4e   :  { %2871 = shalt.err (!%p2868_p6)
}
  0x4f   :  { %s2872_s3 = scalar_lea.vmem %s81_s20, 2048  ;;  %p2877_p8 = scmp.lt.s32.totalorder %s81_s20, %s81_s20 }
  0x50   :  { %p2873_p7 = scmp.ne.s32.totalorder %s81_s20, %s2872_s3  ;;  %p2878_p9 = scmp.lt.s32.totalorder %s2872_s3, %s2872_s3 }
  0x52   :  { %p2879_p10 = por %p2878_p9, %p2877_p8 }
  0x54   :  { %p2880_p11 = pnand %p2879_p10, %p2873_p7 }
  0x56   :  { %2883 = shalt.err (!%p2880_p11)
}
  0x57   :  { %86 = dma.hbm_to_vmem [thread:$0]  %s3492_s7, 2048, %s81_s20, [#allocation9], %s2939_s27, %s2939_s27, %s2940_s28  }
  0x58   :  { %s2884_s15 = scalar_lea.hbm %s3494_s9, 1024 }
  0x59   :  { %p2885_p12 = scmp.ne.s32.totalorder %s3494_s9, %s2884_s15  ;;  %p2888_p13 = scmp.lt.u32.totalorder %s2884_s15, %s3494_s9 }
  0x5b   :  { %p2890_p0 = pnand %p2888_p13, %p2885_p12 }
  0x5d   :  { %2893 = shalt.err (!%p2890_p0)
}
  0x5e   :  { %s2894_s21 = scalar_lea.vmem %s3069_s13, 1024  ;;  %p2899_p2 = scmp.lt.s32.totalorder %s3069_s13, %s3069_s13 }
  0x5f   :  { %p2895_p1 = scmp.ne.s32.totalorder %s3069_s13, %s2894_s21  ;;  %p2900_p3 = scmp.lt.s32.totalorder %s2894_s21, %s2894_s21 }
  0x61   :  { %p2901_p4 = por %p2900_p3, %p2899_p2 }
  0x63   :  { %p2902_p5 = pnand %p2901_p4, %p2895_p1 }
  0x65   :  { %2905 = shalt.err (!%p2902_p5)
}
  0x66   :  { %100 = dma.hbm_to_vmem [thread:$0]  %s3494_s9, 1024, %s3069_s13, [#allocation12], %s2939_s27, %s2939_s27, %s2940_s28  }
  0x67   :  { %2928 = dma.done.wait [#allocation3], 2048  }
  0x68   :  { %2929 = vsyncadd [#allocation3], 4294965248 }
  0x69   :  { %2930 = dma.done.wait [#allocation6], 5120  }
  0x6a   :  { %2931 = vsyncadd [#allocation6], 4294962176 }
  0x6b   :  { %2932 = dma.done.wait [#allocation9], 10240  }
  0x6c   :  { %2933 = vsyncadd [#allocation9], 4294957056 }
  0x6d   :  { %2934 = dma.done.wait [#allocation12], 1024  }
  0x6e   :  { %2935 = vsyncadd [#allocation12], 4294966272  ;;  %v3106_v0 = vld [vmem:[#allocation2 + $0x10] sm:$0xff]  ;;  %v3108_v1 = vld [vmem:[#allocation2] sm:$0xff] }
  0x6f   :  { %142 = vadd.xlane.f32.xlu1 %v3106_v0  ;;  %138 = vadd.xlane.f32.xlu0 %v3108_v1  ;;  %v3112_v2 = vld [vmem:[#allocation2 + $0x18] sm:$0xff]  ;;  %v3114_v3 = vld [vmem:[#allocation2 + $0x8] sm:$0xff]  ;;  %v187_v5 = vmul.f32 %v3108_v1, %v3108_v1  ;;  %v2566_v6 = vld [vmem:[#allocation5] sm:$0xff]   ;;  %v189_v8 = vmul.f32 %v3106_v0, %v3106_v0 }
  0x70   :  { %v188_v4 = vmul.f32 %v3114_v3, %v3114_v3  ;;  %2424 = vmatprep.subr.bf16.mxu0 %v2566_v6  ;;  %v190_v7 = vmul.f32 %v3112_v2, %v3112_v2  ;;  %v3126_v9 = vld [vmem:[#allocation2 + $0x28] sm:$0xff]  ;;  %v3128_v10 = vld [vmem:[#allocation2 + $0x20] sm:$0xff]  ;;  %v3130_v11 = vld [vmem:[#allocation2 + $0x38] sm:$0xff] }
  0x71   :  { %2425 = vmatpush3.bf16.msra.mxu0 %v2566_v6  ;;  %v3132_v12 = vld [vmem:[#allocation2 + $0x30] sm:$0xff]  ;;  %v2567_v13 = vld [vmem:[#allocation5 + $0x8] sm:$0xff]   ;;  %v192_v15 = vmul.f32 %v3126_v9, %v3126_v9  ;;  %v191_v16 = vmul.f32 %v3128_v10, %v3128_v10  ;;  %v194_v17 = vmul.f32 %v3130_v11, %v3130_v11  ;;  %v2569_v19 = vld [vmem:[#allocation5 + $0x18] sm:$0xff]  }
  0x72   :  { %2426 = vmatprep.subr.bf16.mxu0 %v2567_v13  ;;  %v2568_v14 = vld [vmem:[#allocation5 + $0x10] sm:$0xff]   ;;  %v193_v18 = vmul.f32 %v3132_v12, %v3132_v12  ;;  %v3146_v20 = vld [vmem:[#allocation2 + $0x48] sm:$0xff]  ;;  %v3148_v21 = vld [vmem:[#allocation2 + $0x40] sm:$0xff] }
  0x73   :  { %144 = vadd.xlane.f32.xlu1 %v3112_v2  ;;  %140 = vadd.xlane.f32.xlu0 %v3114_v3  ;;  %v2570_v22 = vld [vmem:[#allocation5 + $0x20] sm:$0xff]   ;;  %v3150_v23 = vld [vmem:[#allocation2 + $0x58] sm:$0xff]  ;;  %v3152_v24 = vld [vmem:[#allocation2 + $0x50] sm:$0xff]  ;;  %v196_v26 = vmul.f32 %v3146_v20, %v3146_v20  ;;  %v195_v27 = vmul.f32 %v3148_v21, %v3148_v21 }
  0x74   :  { %v2571_v25 = vld [vmem:[#allocation5 + $0x28] sm:$0xff]   ;;  %v2572_v28 = vld [vmem:[#allocation5 + $0x30] sm:$0xff]   ;;  %v198_v29 = vmul.f32 %v3150_v23, %v3150_v23  ;;  %v197_v30 = vmul.f32 %v3152_v24, %v3152_v24  ;;  %v2573_v31 = vld [vmem:[#allocation5 + $0x38] sm:$0xff]  }
  0x75   :  { %2427 = vmatpush3.bf16.msra.mxu0 %v2567_v13  ;;  %v3166_v32 = vld [vmem:[#allocation2 + $0x68] sm:$0xff]  ;;  %v3168_v33 = vld [vmem:[#allocation2 + $0x60] sm:$0xff]  ;;  %v3170_v34 = vld [vmem:[#allocation2 + $0x78] sm:$0xff] }
  0x76   :  { %2428 = vmatprep.subr.bf16.mxu0 %v2568_v14  ;;  %v3172_v35 = vld [vmem:[#allocation2 + $0x70] sm:$0xff]  ;;  %v200_v36 = vmul.f32 %v3166_v32, %v3166_v32  ;;  %v199_v37 = vmul.f32 %v3168_v33, %v3168_v33  ;;  %v202_v38 = vmul.f32 %v3170_v34, %v3170_v34  ;;  %v2578_v41 = vld [vmem:[#allocation7 + $0xc] ss:$16 sps:$4 sm:$0xff]  }
  0x77   :  { %205 = vadd.xlane.f32.xlu1 %v188_v4  ;;  %203 = vadd.xlane.f32.xlu0 %v187_v5  ;;  %v201_v39 = vmul.f32 %v3172_v35, %v3172_v35  ;;  %v2574_v40 = vld [vmem:[#allocation7 + $0x4] ss:$16 sps:$4 sm:$0xff]   ;;  %v2579_v42 = vld [vmem:[#allocation7] ss:$16 sps:$4 sm:$0xff]  }
  0x78   :  { %v2580_v43 = vld [vmem:[#allocation7 + $0x24] ss:$16 sps:$4 sm:$0xff]   ;;  %745 = vmatprep.subr.bf16.mxu1 %v2574_v40  ;;  %v2585_v44 = vld [vmem:[#allocation7 + $0x20] ss:$16 sps:$4 sm:$0xff]  }
  0x79   :  { %2429 = vmatpush3.bf16.msra.mxu0 %v2568_v14  ;;  %746 = vmatpush1.bf16.msra.mxu1 %v2579_v42  ;;  %v2586_v45 = vld [vmem:[#allocation7 + $0x44] ss:$16 sps:$4 sm:$0xff]   ;;  %v2591_v46 = vld [vmem:[#allocation7 + $0x40] ss:$16 sps:$4 sm:$0xff]  }
  0x7a   :  { %2430 = vmatprep.subr.bf16.mxu0 %v2569_v19  ;;  %747 = vmatprep.subr.bf16.mxu1 %v2580_v43  ;;  %v2592_v47 = vld [vmem:[#allocation7 + $0x64] ss:$16 sps:$4 sm:$0xff]   ;;  %v2597_v48 = vld [vmem:[#allocation7 + $0x60] ss:$16 sps:$4 sm:$0xff]  }
  0x7b   :  { %209 = vadd.xlane.f32.xlu1 %v190_v7  ;;  %207 = vadd.xlane.f32.xlu0 %v189_v8  ;;  %v2598_v49 = vld [vmem:[#allocation7 + $0x84] ss:$16 sps:$4 sm:$0xff]   ;;  %v2603_v50 = vld [vmem:[#allocation7 + $0x80] ss:$16 sps:$4 sm:$0xff]  }
  0x7c   :  { %v2604_v51 = vld [vmem:[#allocation7 + $0xa4] ss:$16 sps:$4 sm:$0xff]   ;;  %v2609_v52 = vld [vmem:[#allocation7 + $0xa0] ss:$16 sps:$4 sm:$0xff]  }
  0x7d   :  { %2431 = vmatpush3.bf16.msra.mxu0 %v2569_v19  ;;  %748 = vmatpush1.bf16.msra.mxu1 %v2585_v44 }
  0x7e   :  { %2432 = vmatprep.subr.bf16.mxu0 %v2570_v22  ;;  %749 = vmatprep.subr.bf16.mxu1 %v2586_v45 }
  0x7f   :  { %148 = vadd.xlane.f32.xlu1 %v3126_v9  ;;  %146 = vadd.xlane.f32.xlu0 %v3128_v10 }
  0x81   :  { %2433 = vmatpush3.bf16.msra.mxu0 %v2570_v22  ;;  %750 = vmatpush1.bf16.msra.mxu1 %v2591_v46 }
  0x82   :  { %2434 = vmatprep.subr.bf16.mxu0 %v2571_v25  ;;  %751 = vmatprep.subr.bf16.mxu1 %v2592_v47 }
  0x83   :  { %152 = vadd.xlane.f32.xlu1 %v3130_v11  ;;  %150 = vadd.xlane.f32.xlu0 %v3132_v12 }
  0x85   :  { %2435 = vmatpush3.bf16.msra.mxu0 %v2571_v25  ;;  %752 = vmatpush1.bf16.msra.mxu1 %v2597_v48 }
  0x86   :  { %2436 = vmatprep.subr.bf16.mxu0 %v2572_v28  ;;  %753 = vmatprep.subr.bf16.mxu1 %v2598_v49 }
  0x87   :  { %213 = vadd.xlane.f32.xlu1 %v192_v15  ;;  %211 = vadd.xlane.f32.xlu0 %v191_v16 }
  0x89   :  { %2437 = vmatpush3.bf16.msra.mxu0 %v2572_v28  ;;  %754 = vmatpush1.bf16.msra.mxu1 %v2603_v50 }
  0x8a   :  { %2438 = vmatprep.subr.bf16.mxu0 %v2573_v31  ;;  %755 = vmatprep.subr.bf16.mxu1 %v2604_v51 }
  0x8b   :  { %217 = vadd.xlane.f32.xlu1 %v194_v17  ;;  %215 = vadd.xlane.f32.xlu0 %v193_v18 }
  0x8d   :  { %2439 = vmatpush3.bf16.msra.mxu0 %v2573_v31  ;;  %756 = vmatpush1.bf16.msra.mxu1 %v2609_v52 }
  0x8e   :  { %858 = vmatprep.subr.bf16.mxu0 %v2578_v41 }
  0x8f   :  { %156 = vadd.xlane.f32.xlu1 %v3146_v20  ;;  %154 = vadd.xlane.f32.xlu0 %v3148_v21 }
  0x93   :  { %160 = vadd.xlane.f32.xlu1 %v3150_v23  ;;  %158 = vadd.xlane.f32.xlu0 %v3152_v24 }
  0x97   :  { %221 = vadd.xlane.f32.xlu1 %v196_v26  ;;  %219 = vadd.xlane.f32.xlu0 %v195_v27 }
  0x9b   :  { %225 = vadd.xlane.f32.xlu1 %v198_v29  ;;  %223 = vadd.xlane.f32.xlu0 %v197_v30 }
  0x9f   :  { %164 = vadd.xlane.f32.xlu1 %v3166_v32  ;;  %162 = vadd.xlane.f32.xlu0 %v3168_v33 }
  0xa3   :  { %168 = vadd.xlane.f32.xlu1 %v3170_v34  ;;  %166 = vadd.xlane.f32.xlu0 %v3172_v35 }
  0xa7   :  { %229 = vadd.xlane.f32.xlu1 %v200_v36  ;;  %227 = vadd.xlane.f32.xlu0 %v199_v37 }
  0xab   :  { %233 = vadd.xlane.f32.xlu1 %v202_v38  ;;  %231 = vadd.xlane.f32.xlu0 %v201_v39 }
  0xfc   :  { %v143_v53 = vpop.xlane.xlu1 %142  ;;  %v139_v54 = vpop.xlane.xlu0 %138 }
  0xfd   :  { %v171_v55 = vmul.f32 0.0078125, %v139_v54  ;;  %v173_v59 = vmul.f32 0.0078125, %v143_v53 }
  0xff   :  { %v251_v60 = vmul.f32 %v171_v55, %v171_v55  ;;  %v253_v13 = vmul.f32 %v173_v59, %v173_v59  ;;  %v283_v37 = vsub.f32 %v3108_v1, %v171_v55  ;;  %v285_v49 = vsub.f32 %v3106_v0, %v173_v59  ;;  %v2576_v0 = vld [vmem:[#allocation7 + $0x8] ss:$16 sps:$4 sm:$0xff]  }
 0x100   :  { %v145_v56 = vpop.xlane.xlu1 %144  ;;  %v141_v57 = vpop.xlane.xlu0 %140 }
 0x101   :  { %v172_v58 = vmul.f32 0.0078125, %v141_v57  ;;  %v174_v63 = vmul.f32 0.0078125, %v145_v56 }
 0x103   :  { %v252_v4 = vmul.f32 %v172_v58, %v172_v58  ;;  %v254_v16 = vmul.f32 %v174_v63, %v174_v63  ;;  %v284_v31 = vsub.f32 %v3114_v3, %v172_v58  ;;  %v286_v48 = vsub.f32 %v3112_v2, %v174_v63 }
 0x104   :  { %v206_v61 = vpop.xlane.xlu1 %205  ;;  %v204_v62 = vpop.xlane.xlu0 %203 }
 0x105   :  { %v236_v5 = vmul.f32 0.0078125, %v206_v61  ;;  %v235_v6 = vmul.f32 0.0078125, %v204_v62 }
 0x107   :  { %v268_v7 = vsub.f32 %v236_v5, %v252_v4  ;;  %v267_v8 = vsub.f32 %v235_v6, %v251_v60  ;;  %v2584_v4 = vld [vmem:[#allocation7 + $0x2c] ss:$16 sps:$4 sm:$0xff]  }
 0x108   :  { %v210_v14 = vpop.xlane.xlu1 %209  ;;  %v208_v15 = vpop.xlane.xlu0 %207 }
 0x109   :  { %2742 = vrsqrt.f32 %v268_v7  ;;  %v238_v17 = vmul.f32 0.0078125, %v210_v14  ;;  %v237_v18 = vmul.f32 0.0078125, %v208_v15  ;;  %v2582_v7 = vld [vmem:[#allocation7 + $0x28] ss:$16 sps:$4 sm:$0xff]  }
 0x10a   :  { %2744 = vrsqrt.f32 %v267_v8  ;;  %v2590_v8 = vld [vmem:[#allocation7 + $0x4c] ss:$16 sps:$4 sm:$0xff]  }
 0x10b   :  { %v270_v19 = vsub.f32 %v238_v17, %v254_v16  ;;  %v269_v22 = vsub.f32 %v237_v18, %v253_v13  ;;  %v2588_v18 = vld [vmem:[#allocation7 + $0x48] ss:$16 sps:$4 sm:$0xff]  }
 0x10c   :  { %v149_v25 = vpop.xlane.xlu1 %148  ;;  %v147_v26 = vpop.xlane.xlu0 %146 }
 0x10d   :  { %2746 = vrsqrt.f32 %v270_v19  ;;  %v3186_v27 = vmul.f32 0.0078125, %v149_v25  ;;  %v3188_v30 = vmul.f32 0.0078125, %v147_v26  ;;  %v2596_v25 = vld [vmem:[#allocation7 + $0x6c] ss:$16 sps:$4 sm:$0xff]  }
 0x10e   :  { %2748 = vrsqrt.f32 %v269_v22 }
 0x10f   :  { %v256_v39 = vmul.f32 %v3186_v27, %v3186_v27  ;;  %v255_v45 = vmul.f32 %v3188_v30, %v3188_v30  ;;  %v288_v17 = vsub.f32 %v3126_v9, %v3186_v27  ;;  %v287_v22 = vsub.f32 %v3128_v10, %v3188_v30  ;;  %v2594_v30 = vld [vmem:[#allocation7 + $0x68] ss:$16 sps:$4 sm:$0xff]  }
 0x110   :  { %v153_v28 = vpop.xlane.xlu1 %152  ;;  %v151_v29 = vpop.xlane.xlu0 %150 }
 0x111   :  { %v3194_v40 = vmul.f32 0.0078125, %v153_v28  ;;  %v3196_v41 = vmul.f32 0.0078125, %v151_v29 }
 0x113   :  { %v2743_v36 = vpop.eup %2742  ;;  %v258_v54 = vmul.f32 %v3194_v40, %v3194_v40  ;;  %v257_v55 = vmul.f32 %v3196_v41, %v3196_v41  ;;  %v290_v10 = vsub.f32 %v3130_v11, %v3194_v40 }
 0x114   :  { %v2745_v38 = vpop.eup %2744  ;;  %v214_v42 = vpop.xlane.xlu1 %213  ;;  %v316_v44 = vmul.f32 %v2743_v36, %v284_v31 }
 0x115   :  { %v212_v43 = vpop.xlane.xlu0 %211  ;;  %v240_v46 = vmul.f32 0.0078125, %v214_v42  ;;  %v315_v3 = vmul.f32 %v2745_v38, %v283_v37 }
 0x116   :  { %v239_v47 = vmul.f32 0.0078125, %v212_v43 }
 0x117   :  { %v2747_v1 = vpop.eup %2746  ;;  %v272_v50 = vsub.f32 %v240_v46, %v256_v39  ;;  %v331_v52 = vpack.c.bf16 %v316_v44, %v315_v3  ;;  %v289_v44 = vsub.f32 %v3132_v12, %v3196_v41  ;;  %v2602_v3 = vld [vmem:[#allocation7 + $0x8c] ss:$16 sps:$4 sm:$0xff]   ;;  %v2600_v41 = vld [vmem:[#allocation7 + $0x88] ss:$16 sps:$4 sm:$0xff]  }
 0x118   :  { %v271_v51 = vsub.f32 %v239_v47, %v255_v45  ;;  %v2749_v53 = vpop.eup %2748  ;;  %v218_v56 = vpop.xlane.xlu1 %217  ;;  %v318_v58 = vmul.f32 %v2747_v1, %v286_v48 }
 0x119   :  { %v216_v57 = vpop.xlane.xlu0 %215  ;;  %2750 = vrsqrt.f32 %v272_v50  ;;  %v242_v60 = vmul.f32 0.0078125, %v218_v56  ;;  %2440 = vmatprep.mubr.bf16.mxu0 %v331_v52  ;;  %v317_v61 = vmul.f32 %v2749_v53, %v285_v49  ;;  %v2608_v56 = vld [vmem:[#allocation7 + $0xac] ss:$16 sps:$4 sm:$0xff]  }
 0x11a   :  { %v241_v2 = vmul.f32 0.0078125, %v216_v57  ;;  %2752 = vrsqrt.f32 %v271_v51 }
 0x11b   :  { %v274_v59 = vsub.f32 %v242_v60, %v258_v54  ;;  %v332_v63 = vpack.c.bf16 %v318_v58, %v317_v61  ;;  %v2606_v60 = vld [vmem:[#allocation7 + $0xa8] ss:$16 sps:$4 sm:$0xff]  }
 0x11c   :  { %v273_v62 = vsub.f32 %v241_v2, %v257_v55  ;;  %v157_v5 = vpop.xlane.xlu1 %156 }
 0x11d   :  { %v155_v6 = vpop.xlane.xlu0 %154  ;;  %2754 = vrsqrt.f32 %v274_v59  ;;  %2441 = vmatmul.mubr.bf16.vlgmr.msra.gmra.mrb[0].mxu0 %v332_v63  ;;  %v3206_v13 = vmul.f32 0.0078125, %v157_v5 }
 0x11e   :  { %2756 = vrsqrt.f32 %v273_v62  ;;  %859 = vmatpush1.bf16.msra.mxu0 %v2576_v0  ;;  %v3208_v16 = vmul.f32 0.0078125, %v155_v6 }
 0x11f   :  { %860 = vmatprep.subr.bf16.mxu0 %v2584_v4  ;;  %v260_v28 = vmul.f32 %v3206_v13, %v3206_v13  ;;  %v292_v62 = vsub.f32 %v3146_v20, %v3206_v13 }
 0x120   :  { %v161_v14 = vpop.xlane.xlu1 %160  ;;  %v259_v9 = vmul.f32 %v3208_v16, %v3208_v16  ;;  %v291_v4 = vsub.f32 %v3148_v21, %v3208_v16 }
 0x121   :  { %v159_v15 = vpop.xlane.xlu0 %158  ;;  %v3216_v29 = vmul.f32 0.0078125, %v161_v14 }
 0x122   :  { %861 = vmatpush1.bf16.msra.mxu0 %v2582_v7  ;;  %v3218_v31 = vmul.f32 0.0078125, %v159_v15 }
 0x123   :  { %v2751_v19 = vpop.eup %2750  ;;  %862 = vmatprep.subr.bf16.mxu0 %v2590_v8  ;;  %v262_v1 = vmul.f32 %v3216_v29, %v3216_v29 }
 0x124   :  { %v2753_v26 = vpop.eup %2752  ;;  %v222_v36 = vpop.xlane.xlu1 %221  ;;  %v320_v38 = vmul.f32 %v2751_v19, %v288_v17  ;;  %v261_v49 = vmul.f32 %v3218_v31, %v3218_v31  ;;  %v293_v13 = vsub.f32 %v3152_v24, %v3218_v31 }
 0x125   :  { %v220_v37 = vpop.xlane.xlu0 %219  ;;  %v244_v27 = vmul.f32 0.0078125, %v222_v36  ;;  %v319_v42 = vmul.f32 %v2753_v26, %v287_v22  ;;  %v294_v26 = vsub.f32 %v3150_v23, %v3216_v29 }
 0x126   :  { %v243_v39 = vmul.f32 0.0078125, %v220_v37  ;;  %863 = vmatpush1.bf16.msra.mxu0 %v2588_v18 }
 0x127   :  { %v2755_v43 = vpop.eup %2754  ;;  %v276_v45 = vsub.f32 %v244_v27, %v260_v28  ;;  %v333_v47 = vpack.c.bf16 %v320_v38, %v319_v42  ;;  %864 = vmatprep.subr.bf16.mxu0 %v2596_v25 }
 0x128   :  { %v275_v46 = vsub.f32 %v243_v39, %v259_v9  ;;  %v2757_v48 = vpop.eup %2756  ;;  %v226_v50 = vpop.xlane.xlu1 %225  ;;  %v322_v40 = vmul.f32 %v2755_v43, %v290_v10 }
 0x129   :  { %v224_v11 = vpop.xlane.xlu0 %223  ;;  %2758 = vrsqrt.f32 %v276_v45  ;;  %v246_v51 = vmul.f32 0.0078125, %v226_v50  ;;  %2444 = vmatprep.mubr.bf16.mxu0 %v333_v47  ;;  %v321_v12 = vmul.f32 %v2757_v48, %v289_v44 }
 0x12a   :  { %v245_v52 = vmul.f32 0.0078125, %v224_v11  ;;  %2760 = vrsqrt.f32 %v275_v46  ;;  %865 = vmatpush1.bf16.msra.mxu0 %v2594_v30 }
 0x12b   :  { %v278_v53 = vsub.f32 %v246_v51, %v262_v1  ;;  %v334_v55 = vpack.c.bf16 %v322_v40, %v321_v12  ;;  %866 = vmatprep.subr.bf16.mxu0 %v2602_v3  ;;  %v2612_v12 = vld [vmem:[#allocation7 + $0xc8] ss:$16 sps:$4 sm:$0xff]  }
 0x12c   :  { %v277_v54 = vsub.f32 %v245_v52, %v261_v49  ;;  %v165_v57 = vpop.xlane.xlu1 %164  ;;  %v2610_v52 = vld [vmem:[#allocation7 + $0xc4] ss:$16 sps:$4 sm:$0xff]  }
 0x12d   :  { %v163_v58 = vpop.xlane.xlu0 %162  ;;  %2762 = vrsqrt.f32 %v278_v53  ;;  %2445 = vmatmul.mubr.bf16.gmra.mrb[4].mxu0 %v334_v55  ;;  %v184_v2 = vmul.f32 0.0078125, %v165_v57  ;;  %757 = vmatprep.subr.bf16.mxu1 %v2610_v52  ;;  %v2618_v53 = vld [vmem:[#allocation7 + $0xe8] ss:$16 sps:$4 sm:$0xff]   ;;  %v2624_v55 = vld [vmem:[#allocation8 + $0x4] ss:$8 sps:$4 sm:$0xff]  }
 0x12e   :  { %2764 = vrsqrt.f32 %v277_v54  ;;  %867 = vmatpush1.bf16.msra.mxu0 %v2600_v41  ;;  %v183_v59 = vmul.f32 0.0078125, %v163_v58  ;;  %v2615_v41 = vld [vmem:[#allocation7 + $0xc0] ss:$16 sps:$4 sm:$0xff]   ;;  %v2648_v52 = vld [vmem:[#allocation8 + $0x84] ss:$8 sps:$4 sm:$0xff]  }
 0x12f   :  { %868 = vmatprep.subr.bf16.mxu0 %v2608_v56  ;;  %v264_v6 = vmul.f32 %v184_v2, %v184_v2  ;;  %v296_v24 = vsub.f32 %v3166_v32, %v184_v2  ;;  %v2614_v32 = vld [vmem:[#allocation7 + $0xcc] ss:$16 sps:$4 sm:$0xff]   ;;  %758 = vmatpush1.bf16.msra.mxu1 %v2615_v41  ;;  %v2621_v54 = vld [vmem:[#allocation7 + $0xe0] ss:$16 sps:$4 sm:$0xff]  }
 0x130   :  { %v169_v61 = vpop.xlane.xlu1 %168  ;;  %v263_v18 = vmul.f32 %v183_v59, %v183_v59  ;;  %v295_v44 = vsub.f32 %v3168_v33, %v183_v59  ;;  %v2616_v33 = vld [vmem:[#allocation7 + $0xe4] ss:$16 sps:$4 sm:$0xff]   ;;  %v3247_v56 = vld [vmem:[%s3487_s2] ss:$0 sm:$0xff] }
 0x131   :  { %v167_v0 = vpop.xlane.xlu0 %166  ;;  %v186_v7 = vmul.f32 0.0078125, %v169_v61  ;;  %759 = vmatprep.subr.bf16.mxu1 %v2616_v33 }
 0x132   :  { %869 = vmatpush1.bf16.msra.mxu0 %v2606_v60  ;;  %v185_v8 = vmul.f32 0.0078125, %v167_v0 }
 0x133   :  { %v2759_v63 = vpop.eup %2758  ;;  %v266_v37 = vmul.f32 %v186_v7, %v186_v7  ;;  %v298_v3 = vsub.f32 %v3170_v34, %v186_v7  ;;  %870 = vmatprep.subr.bf16.mxu0 %v2614_v32  ;;  %v2620_v34 = vld [vmem:[#allocation7 + $0xec] ss:$16 sps:$4 sm:$0xff]   ;;  %760 = vmatpush1.bf16.msra.mxu1 %v2621_v54  ;;  %v2649_v54 = vld [vmem:[#allocation8 + $0x90] ss:$8 sps:$4 sm:$0xff]  }
 0x134   :  { %v2761_v5 = vpop.eup %2760  ;;  %v230_v14 = vpop.xlane.xlu1 %229  ;;  %v324_v17 = vmul.f32 %v2759_v63, %v292_v62  ;;  %v265_v38 = vmul.f32 %v185_v8, %v185_v8  ;;  %v297_v1 = vsub.f32 %v3172_v35, %v185_v8  ;;  %v2950_v35 = vmov 0   ;;  %1463 = vmatprep.subr.bf16.mxu1 %v2624_v55  ;;  %v2654_v55 = vld [vmem:[#allocation8 + $0xa4] ss:$8 sps:$4 sm:$0xff]  }
 0x135   :  { %v228_v15 = vpop.xlane.xlu0 %227  ;;  %v248_v19 = vmul.f32 0.0078125, %v230_v14  ;;  %v323_v25 = vmul.f32 %v2761_v5, %v291_v4  ;;  %777 = vmatprep.mubr.bf16.mxu1 %v2950_v35  ;;  %v2622_v14 = vld [vmem:[#allocation8] ss:$8 sps:$4 sm:$0xff]  }
 0x136   :  { %v247_v22 = vmul.f32 0.0078125, %v228_v15  ;;  %871 = vmatpush1.bf16.msra.mxu0 %v2612_v12  ;;  %v2627_v15 = vld [vmem:[#allocation8 + $0x14] ss:$8 sps:$4 sm:$0xff]  }
 0x137   :  { %v2763_v20 = vpop.eup %2762  ;;  %v280_v28 = vsub.f32 %v248_v19, %v264_v6  ;;  %v335_v16 = vpack.c.bf16 %v324_v17, %v323_v25  ;;  %872 = vmatprep.subr.bf16.mxu0 %v2620_v34  ;;  %v2625_v17 = vld [vmem:[#allocation8 + $0x10] ss:$8 sps:$4 sm:$0xff]   ;;  %v2646_v34 = vld [vmem:[#allocation8 + $0x80] ss:$8 sps:$4 sm:$0xff]  }
 0x138   :  { %v279_v21 = vsub.f32 %v247_v22, %v263_v18  ;;  %v2765_v36 = vpop.eup %2764  ;;  %v234_v9 = vpop.xlane.xlu1 %233  ;;  %v326_v39 = vmul.f32 %v2763_v20, %v294_v26  ;;  %v2630_v18 = vld [vmem:[#allocation8 + $0x24] ss:$8 sps:$4 sm:$0xff]   ;;  %v2628_v22 = vld [vmem:[#allocation8 + $0x20] ss:$8 sps:$4 sm:$0xff]   ;;  %v2633_v20 = vld [vmem:[#allocation8 + $0x34] ss:$8 sps:$4 sm:$0xff]  }
 0x139   :  { %v232_v27 = vpop.xlane.xlu0 %231  ;;  %2766 = vrsqrt.f32 %v280_v28  ;;  %v250_v42 = vmul.f32 0.0078125, %v234_v9  ;;  %2448 = vmatprep.mubr.bf16.mxu0 %v335_v16  ;;  %v325_v30 = vmul.f32 %v2765_v36, %v293_v13 }
 0x13a   :  { %v249_v10 = vmul.f32 0.0078125, %v232_v27  ;;  %2768 = vrsqrt.f32 %v279_v21  ;;  %873 = vmatpush1.bf16.msra.mxu0 %v2618_v53  ;;  %v2636_v27 = vld [vmem:[#allocation8 + $0x44] ss:$8 sps:$4 sm:$0xff]   ;;  %v2651_v53 = vld [vmem:[#allocation8 + $0x94] ss:$8 sps:$4 sm:$0xff]  }
 0x13b   :  { %v282_v23 = vsub.f32 %v250_v42, %v266_v37  ;;  %v336_v43 = vpack.c.bf16 %v326_v39, %v325_v30  ;;  %v2631_v37 = vld [vmem:[#allocation8 + $0x30] ss:$8 sps:$4 sm:$0xff]  }
 0x13c   :  { %v281_v29 = vsub.f32 %v249_v10, %v265_v38 }
 0x13d   :  { %2770 = vrsqrt.f32 %v282_v23  ;;  %2449 = vmatmul.mubr.bf16.gmra.mrb[8].mxu0 %v336_v43  ;;  %v2634_v23 = vld [vmem:[#allocation8 + $0x40] ss:$8 sps:$4 sm:$0xff]   ;;  %v2637_v43 = vld [vmem:[#allocation8 + $0x50] ss:$8 sps:$4 sm:$0xff]  }
 0x13e   :  { %2772 = vrsqrt.f32 %v281_v29  ;;  %v2639_v29 = vld [vmem:[#allocation8 + $0x54] ss:$8 sps:$4 sm:$0xff]  }
 0x143   :  { %v2767_v31 = vpop.eup %2766 }
 0x144   :  { %v2769_v45 = vpop.eup %2768  ;;  %v328_v46 = vmul.f32 %v2767_v31, %v296_v24  ;;  %v2642_v24 = vld [vmem:[#allocation8 + $0x64] ss:$8 sps:$4 sm:$0xff]  }
 0x145   :  { %v327_v47 = vmul.f32 %v2769_v45, %v295_v44  ;;  %v2640_v44 = vld [vmem:[#allocation8 + $0x60] ss:$8 sps:$4 sm:$0xff]  }
 0x147   :  { %v2771_v48 = vpop.eup %2770  ;;  %v337_v49 = vpack.c.bf16 %v328_v46, %v327_v47  ;;  %v2645_v47 = vld [vmem:[#allocation8 + $0x74] ss:$8 sps:$4 sm:$0xff]  }
 0x148   :  { %v2773_v50 = vpop.eup %2772  ;;  %v330_v11 = vmul.f32 %v2771_v48, %v298_v3 }
 0x149   :  { %2452 = vmatprep.mubr.bf16.mxu0 %v337_v49  ;;  %v329_v40 = vmul.f32 %v2773_v50, %v297_v1 }
 0x14b   :  { %v338_v51 = vpack.c.bf16 %v330_v11, %v329_v40  ;;  %v2643_v11 = vld [vmem:[#allocation8 + $0x70] ss:$8 sps:$4 sm:$0xff]  }
 0x14d   :  { %2453 = vmatmul.mubr.bf16.gmra.mrb[12].mxu0 %v338_v51 }
 0x14e   :  { %890 = vmatprep.mubr.bf16.mxu0 %v2950_v35 }
 0x1f0   :  { %v2442_v57 = vpop.f32.mrb[0].mxu0 }
 0x1f1   :  { %v453_v58 = vadd.f32 %v2442_v57, %v3247_v56  ;;  %v444_v60 = vpop.f32.mrb[1].mxu0 }
 0x1f2   :  { %v445_v2 = vadd.f32 %v3247_v56, %v444_v60  ;;  %v2443_v61 = vpop.f32.mrb[2].mxu0 }
 0x1f3   :  { %v456_v0 = vadd.f32 %v2443_v61, %v3247_v56  ;;  %v447_v59 = vpop.f32.mrb[3].mxu0  ;;  %v509_v63 = vmax.f32 %v453_v58, 0.0  ;;  %v2652_v58 = vld [vmem:[#allocation8 + $0xa0] ss:$8 sps:$4 sm:$0xff]   ;;  %v2657_v61 = vld [vmem:[#allocation8 + $0xb4] ss:$8 sps:$4 sm:$0xff]  }
 0x1f4   :  { %v448_v62 = vadd.f32 %v3247_v56, %v447_v59  ;;  %v507_v5 = vmax.f32 %v445_v2, 0.0 }
 0x1f5   :  { %v510_v4 = vmax.f32 %v456_v0, 0.0 }
 0x1f6   :  { %v508_v6 = vmax.f32 %v448_v62, 0.0 }
 0x1f7   :  { %v524_v7 = vpack.c.bf16 %v510_v4, %v509_v63 }
 0x1f8   :  { %v523_v8 = vpack.c.bf16 %v508_v6, %v507_v5  ;;  %v2655_v5 = vld [vmem:[#allocation8 + $0xb0] ss:$8 sps:$4 sm:$0xff]  }
 0x1fa   :  { %778 = vmatmul.mubr.bf16.vlgmr.msra.gmra.mrb[0].mxu1 %v523_v8  ;;  %891 = vmatmul.mubr.bf16.vlgmr.msra.gmra.mrb[16].mxu0 %v523_v8  ;;  %v2660_v8 = vld [vmem:[#allocation8 + $0xc4] ss:$8 sps:$4 sm:$0xff]  }
 0x1fb   :  { %787 = vmatprep.mubr.bf16.mxu1 %v2950_v35  ;;  %900 = vmatprep.mubr.bf16.mxu0 %v2950_v35 }
 0x1fc   :  { %1464 = vmatpush1.bf16.msra.mxu1 %v2622_v14 }
 0x1fd   :  { %1465 = vmatprep.subr.bf16.mxu1 %v2627_v15 }
 0x200   :  { %v2446_v19 = vpop.f32.mrb[4].mxu0  ;;  %1466 = vmatpush1.bf16.msra.mxu1 %v2625_v17 }
 0x201   :  { %v469_v25 = vadd.f32 %v2446_v19, %v3247_v56  ;;  %v460_v26 = vpop.f32.mrb[5].mxu0  ;;  %1467 = vmatprep.subr.bf16.mxu1 %v2630_v18  ;;  %v2658_v19 = vld [vmem:[#allocation8 + $0xc0] ss:$8 sps:$4 sm:$0xff]  }
 0x202   :  { %v461_v13 = vadd.f32 %v3247_v56, %v460_v26  ;;  %v2447_v28 = vpop.f32.mrb[6].mxu0  ;;  %788 = vmatmul.mubr.bf16.gmra.mrb[4].mxu1 %v524_v7  ;;  %901 = vmatmul.mubr.bf16.gmra.mrb[20].mxu0 %v524_v7  ;;  %v2664_v26 = vld [vmem:[#allocation8 + $0xe0] ss:$8 sps:$4 sm:$0xff]  }
 0x203   :  { %v472_v21 = vadd.f32 %v2447_v28, %v3247_v56  ;;  %v463_v16 = vpop.f32.mrb[7].mxu0  ;;  %797 = vmatprep.mubr.bf16.mxu1 %v2950_v35  ;;  %910 = vmatprep.mubr.bf16.mxu0 %v2950_v35  ;;  %v513_v38 = vmax.f32 %v469_v25, 0.0  ;;  %v2666_v25 = vld [vmem:[#allocation8 + $0xe4] ss:$8 sps:$4 sm:$0xff]  }
 0x204   :  { %v464_v36 = vadd.f32 %v3247_v56, %v463_v16  ;;  %1468 = vmatpush1.bf16.msra.mxu1 %v2628_v22  ;;  %v511_v39 = vmax.f32 %v461_v13, 0.0  ;;  %v2663_v22 = vld [vmem:[#allocation8 + $0xd4] ss:$8 sps:$4 sm:$0xff]   ;;  %v2667_v13 = vld [vmem:[#allocation8 + $0xf0] ss:$8 sps:$4 sm:$0xff]  }
 0x205   :  { %v514_v9 = vmax.f32 %v472_v21, 0.0  ;;  %1469 = vmatprep.subr.bf16.mxu1 %v2633_v20  ;;  %v2669_v20 = vld [vmem:[#allocation8 + $0xf4] ss:$8 sps:$4 sm:$0xff]   ;;  %v2672_v28 = vld [vmem:[#allocation8 + $0x104] ss:$8 sps:$4 sm:$0xff]   ;;  %v565_v21 = vlaneseq }
 0x206   :  { %v512_v42 = vmax.f32 %v464_v36, 0.0 }
 0x207   :  { %v526_v10 = vpack.c.bf16 %v514_v9, %v513_v38  ;;  %v3279_v16 = vshrl.u32 %v565_v21, 7  ;;  %v2673_v21 = vld [vmem:[#allocation8 + $0x110] ss:$8 sps:$4 sm:$0xff]  }
 0x208   :  { %v525_v30 = vpack.c.bf16 %v512_v42, %v511_v39  ;;  %1470 = vmatpush1.bf16.msra.mxu1 %v2631_v37  ;;  %v563_v37 = vld [vmem:[%s3489_s4] sm:$0xf] }
 0x209   :  { %1471 = vmatprep.subr.bf16.mxu1 %v2636_v27  ;;  %v575_v36 = vsub.s32 2, %v3279_v16  ;;  %v571_v38 = vsub.s32 1, %v3279_v16  ;;  %v579_v9 = vsub.s32 3, %v3279_v16 }
 0x20a   :  { %798 = vmatmul.mubr.bf16.gmra.mrb[8].mxu1 %v525_v30  ;;  %911 = vmatmul.mubr.bf16.gmra.mrb[24].mxu0 %v525_v30 }
 0x20b   :  { %807 = vmatprep.mubr.bf16.mxu1 %v2950_v35  ;;  %920 = vmatprep.mubr.bf16.mxu0 %v2950_v35  ;;  %v3292_v39 = vrot.slane %v563_v37, %v575_v36  ;;  %v3296_v42 = vrot.slane %v563_v37, %v571_v38 }
 0x20c   :  { %1472 = vmatpush1.bf16.msra.mxu1 %v2634_v23 }
 0x20d   :  { %1473 = vmatprep.subr.bf16.mxu1 %v2639_v29 }
 0x210   :  { %v2450_v31 = vpop.f32.mrb[8].mxu0  ;;  %1474 = vmatpush1.bf16.msra.mxu1 %v2637_v43 }
 0x211   :  { %v485_v45 = vadd.f32 %v2450_v31, %v3247_v56  ;;  %v476_v46 = vpop.f32.mrb[9].mxu0  ;;  %1475 = vmatprep.subr.bf16.mxu1 %v2642_v24 }
 0x212   :  { %v477_v3 = vadd.f32 %v3247_v56, %v476_v46  ;;  %v2451_v48 = vpop.f32.mrb[10].mxu0  ;;  %808 = vmatmul.mubr.bf16.gmra.mrb[12].mxu1 %v526_v10  ;;  %921 = vmatmul.mubr.bf16.gmra.mrb[28].mxu0 %v526_v10  ;;  %v3298_v10 = vrot.slane %v563_v37, %v579_v9 }
 0x213   :  { %v488_v1 = vadd.f32 %v2451_v48, %v3247_v56  ;;  %v479_v49 = vpop.f32.mrb[11].mxu0  ;;  %817 = vmatprep.mubr.bf16.mxu1 %v2950_v35  ;;  %930 = vmatprep.mubr.bf16.mxu0 %v2950_v35  ;;  %v517_v40 = vmax.f32 %v485_v45, 0.0 }
 0x214   :  { %v480_v50 = vadd.f32 %v3247_v56, %v479_v49  ;;  %1476 = vmatpush1.bf16.msra.mxu1 %v2640_v44  ;;  %v515_v32 = vmax.f32 %v477_v3, 0.0 }
 0x215   :  { %v518_v51 = vmax.f32 %v488_v1, 0.0  ;;  %1477 = vmatprep.subr.bf16.mxu1 %v2645_v47 }
 0x216   :  { %v516_v12 = vmax.f32 %v480_v50, 0.0  ;;  %v2718_v50 = vld [vmem:[#allocation10 + $0x40] sm:$0xff]  }
 0x217   :  { %v528_v41 = vpack.c.bf16 %v518_v51, %v517_v40  ;;  %2344 = vmatprep.subr.bf16.mxu0 %v2718_v50  ;;  %v2676_v50 = vld [vmem:[#allocation8 + $0x120] ss:$8 sps:$4 sm:$0xff]  }
 0x218   :  { %v527_v33 = vpack.c.bf16 %v516_v12, %v515_v32  ;;  %1478 = vmatpush1.bf16.msra.mxu1 %v2643_v11  ;;  %v2719_v11 = vld [vmem:[#allocation10] sm:$0xff]  }
 0x219   :  { %1479 = vmatprep.subr.bf16.mxu1 %v2648_v52  ;;  %v2720_v52 = vld [vmem:[#allocation10 + $0x48] sm:$0xff]   ;;  %2345 = vmatpush3.bf16.msra.mxu0 %v2719_v11 }
 0x21a   :  { %818 = vmatmul.mubr.bf16.gmra.mrb[16].mxu1 %v527_v33  ;;  %931 = vmatmul.mubr.bf16.gmra.mrb[32].mxu0 %v527_v33 }
 0x21b   :  { %827 = vmatprep.mubr.bf16.mxu1 %v2950_v35  ;;  %940 = vmatprep.mubr.bf16.mxu0 %v2950_v35 }
 0x21c   :  { %1480 = vmatpush1.bf16.msra.mxu1 %v2646_v34  ;;  %2346 = vmatprep.subr.bf16.mxu0 %v2720_v52 }
 0x21d   :  { %1481 = vmatprep.subr.bf16.mxu1 %v2651_v53 }
 0x220   :  { %v2454_v57 = vpop.f32.mrb[12].mxu0  ;;  %1482 = vmatpush1.bf16.msra.mxu1 %v2649_v54 }
 0x221   :  { %v501_v60 = vadd.f32 %v2454_v57, %v3247_v56  ;;  %v492_v2 = vpop.f32.mrb[13].mxu0  ;;  %1483 = vmatprep.subr.bf16.mxu1 %v2654_v55  ;;  %v2721_v57 = vld [vmem:[#allocation10 + $0x8] sm:$0xff]  }
 0x222   :  { %v493_v0 = vadd.f32 %v3247_v56, %v492_v2  ;;  %v2455_v59 = vpop.f32.mrb[14].mxu0  ;;  %828 = vmatmul.mubr.bf16.gmra.mrb[20].mxu1 %v528_v41  ;;  %941 = vmatmul.mubr.bf16.gmra.mrb[36].mxu0 %v528_v41  ;;  %v2722_v2 = vld [vmem:[#allocation10 + $0x50] sm:$0xff]  }
 0x223   :  { %v504_v62 = vadd.f32 %v2455_v59, %v3247_v56  ;;  %v495_v63 = vpop.f32.mrb[15].mxu0  ;;  %837 = vmatprep.mubr.bf16.mxu1 %v2950_v35  ;;  %950 = vmatprep.mubr.bf16.mxu0 %v2950_v35  ;;  %v521_v6 = vmax.f32 %v501_v60, 0.0 }
 0x224   :  { %v496_v4 = vadd.f32 %v3247_v56, %v495_v63  ;;  %1484 = vmatpush1.bf16.msra.mxu1 %v2652_v58  ;;  %v519_v14 = vmax.f32 %v493_v0, 0.0  ;;  %v2661_v56 = vld [vmem:[#allocation8 + $0xd0] ss:$8 sps:$4 sm:$0xff]   ;;  %v2670_v63 = vld [vmem:[#allocation8 + $0x100] ss:$8 sps:$4 sm:$0xff]   ;;  %2347 = vmatpush3.bf16.msra.mxu0 %v2721_v57 }
 0x225   :  { %v522_v7 = vmax.f32 %v504_v62, 0.0  ;;  %1485 = vmatprep.subr.bf16.mxu1 %v2657_v61  ;;  %2348 = vmatprep.subr.bf16.mxu0 %v2722_v2  ;;  %v2728_v2 = vld [vmem:[#allocation10 + $0x68] sm:$0xff]  }
 0x226   :  { %v520_v15 = vmax.f32 %v496_v4, 0.0 }
 0x227   :  { %v530_v17 = vpack.c.bf16 %v522_v7, %v521_v6 }
 0x228   :  { %v529_v18 = vpack.c.bf16 %v520_v15, %v519_v14  ;;  %1486 = vmatpush1.bf16.msra.mxu1 %v2655_v5 }
 0x229   :  { %1487 = vmatprep.subr.bf16.mxu1 %v2660_v8  ;;  %v2675_v8 = vld [vmem:[#allocation8 + $0x114] ss:$8 sps:$4 sm:$0xff]  }
 0x22a   :  { %838 = vmatmul.mubr.bf16.gmra.mrb[24].mxu1 %v529_v18  ;;  %951 = vmatmul.mubr.bf16.gmra.mrb[40].mxu0 %v529_v18 }
 0x22b   :  { %847 = vmatprep.mubr.bf16.mxu1 %v2950_v35  ;;  %960 = vmatprep.mubr.bf16.mxu0 %v2950_v35  ;;  %v567_v35 = vsub.s32 0, %v3279_v16 }
 0x22c   :  { %1488 = vmatpush1.bf16.msra.mxu1 %v2658_v19  ;;  %v2723_v19 = vld [vmem:[#allocation10 + $0x10] sm:$0xff]  }
 0x22d   :  { %1489 = vmatprep.subr.bf16.mxu1 %v2663_v22  ;;  %v3290_v27 = vrot.slane %v563_v37, %v567_v35  ;;  %2349 = vmatpush3.bf16.msra.mxu0 %v2723_v19 }
 0x230   :  { %1490 = vmatpush1.bf16.msra.mxu1 %v2661_v56 }
 0x231   :  { %1491 = vmatprep.subr.bf16.mxu1 %v2666_v25 }
 0x232   :  { %848 = vmatmul.mubr.bf16.gmra.mrb[28].mxu1 %v530_v17  ;;  %961 = vmatmul.mubr.bf16.gmra.mrb[44].mxu0 %v530_v17 }
 0x234   :  { %1492 = vmatpush1.bf16.msra.mxu1 %v2664_v26 }
 0x235   :  { %1493 = vmatprep.subr.bf16.mxu1 %v2669_v20  ;;  %v2724_v20 = vld [vmem:[#allocation10 + $0x58] sm:$0xff]  }
 0x236   :  { %2350 = vmatprep.subr.bf16.mxu0 %v2724_v20 }
 0x238   :  { %1494 = vmatpush1.bf16.msra.mxu1 %v2667_v13 }
 0x239   :  { %1576 = vmatprep.subr.bf16.mxu1 %v2672_v28 }
 0x2cd   :  { %v779_v30 = vpop.f32.mrb[0].mxu1  ;;  %v892_v23 = vpop.f32.mrb[16].mxu0 }
 0x2ce   :  { %v780_v29 = vadd.f32 %v779_v30, %v3290_v27  ;;  %v893_v43 = vadd.f32 %v892_v23, %v3292_v39  ;;  %v781_v24 = vpop.f32.mrb[1].mxu1  ;;  %v894_v31 = vpop.f32.mrb[17].mxu0  ;;  %v2678_v23 = vld [vmem:[#allocation8 + $0x124] ss:$8 sps:$4 sm:$0xff]  }
 0x2cf   :  { %v782_v44 = vadd.f32 %v781_v24, %v3296_v42  ;;  %v895_v45 = vadd.f32 %v894_v31, %v3298_v10  ;;  %v783_v46 = vpop.f32.mrb[2].mxu1  ;;  %v896_v47 = vpop.f32.mrb[18].mxu0 }
 0x2d0   :  { %v784_v3 = vadd.f32 %v783_v46, %v3290_v27  ;;  %v897_v48 = vadd.f32 %v896_v47, %v3292_v39  ;;  %v785_v1 = vpop.f32.mrb[3].mxu1  ;;  %v898_v49 = vpop.f32.mrb[19].mxu0  ;;  %v971_v32 = vmax.f32 %v780_v29, 0.0  ;;  %v973_v12 = vmax.f32 %v893_v43, 0.0  ;;  %v2726_v47 = vld [vmem:[#allocation10 + $0x60] sm:$0xff]  }
 0x2d1   :  { %v786_v40 = vadd.f32 %v785_v1, %v3296_v42  ;;  %v899_v51 = vadd.f32 %v898_v49, %v3298_v10  ;;  %v972_v34 = vmax.f32 %v782_v44, 0.0  ;;  %v974_v53 = vmax.f32 %v895_v45, 0.0  ;;  %v2725_v44 = vld [vmem:[#allocation10 + $0x18] sm:$0xff]  }
 0x2d2   :  { %v975_v41 = vmax.f32 %v784_v3, 0.0  ;;  %v977_v33 = vmax.f32 %v897_v48, 0.0  ;;  %2351 = vmatpush3.bf16.msra.mxu0 %v2725_v44 }
 0x2d3   :  { %v976_v54 = vmax.f32 %v786_v40, 0.0  ;;  %v978_v55 = vmax.f32 %v899_v51, 0.0  ;;  %2352 = vmatprep.subr.bf16.mxu0 %v2726_v47 }
 0x2d4   :  { %v1035_v58 = vpack.c.bf16 %v975_v41, %v971_v32  ;;  %v3308_v60 = vpack.c.bf16 %v977_v33, %v973_v12  ;;  %v2681_v32 = vld [vmem:[#allocation8 + $0x134] ss:$8 sps:$4 sm:$0xff]  }
 0x2d5   :  { %v1036_v61 = vpack.c.bf16 %v976_v54, %v972_v34  ;;  %v3310_v0 = vpack.c.bf16 %v978_v55, %v974_v53  ;;  %v789_v59 = vpop.f32.mrb[4].mxu1  ;;  %v902_v62 = vpop.f32.mrb[20].mxu0  ;;  %v2727_v53 = vld [vmem:[#allocation10 + $0x20] sm:$0xff]  }
 0x2d6   :  { %v790_v4 = vadd.f32 %v789_v59, %v3290_v27  ;;  %v903_v5 = vadd.f32 %v902_v62, %v3292_v39  ;;  %v791_v6 = vpop.f32.mrb[5].mxu1  ;;  %v904_v7 = vpop.f32.mrb[21].mxu0  ;;  %v2679_v62 = vld [vmem:[#allocation8 + $0x130] ss:$8 sps:$4 sm:$0xff]   ;;  %2353 = vmatpush3.bf16.msra.mxu0 %v2727_v53 }
 0x2d7   :  { %v792_v14 = vadd.f32 %v791_v6, %v3296_v42  ;;  %v905_v15 = vadd.f32 %v904_v7, %v3298_v10  ;;  %v793_v17 = vpop.f32.mrb[6].mxu1  ;;  %v906_v18 = vpop.f32.mrb[22].mxu0  ;;  %1495 = vmatprep.mubr.bf16.mxu1 %v1036_v61  ;;  %v2684_v7 = vld [vmem:[#allocation8 + $0x144] ss:$8 sps:$4 sm:$0xff]   ;;  %2354 = vmatprep.subr.bf16.mxu0 %v2728_v2 }
 0x2d8   :  { %v794_v22 = vadd.f32 %v793_v17, %v3290_v27  ;;  %v907_v56 = vadd.f32 %v906_v18, %v3292_v39  ;;  %v795_v25 = vpop.f32.mrb[7].mxu1  ;;  %v908_v26 = vpop.f32.mrb[23].mxu0  ;;  %1496 = vmatmul.mubr.bf16.vlgmr.msra.gmra.mrb[32].mxu1 %v1035_v58  ;;  %v979_v36 = vmax.f32 %v790_v4, 0.0  ;;  %v981_v37 = vmax.f32 %v903_v5, 0.0  ;;  %v2729_v18 = vld [vmem:[#allocation10 + $0x28] sm:$0xff]  }
 0x2d9   :  { %v796_v13 = vadd.f32 %v795_v25, %v3296_v42  ;;  %v909_v28 = vadd.f32 %v908_v26, %v3298_v10  ;;  %1577 = vmatpush1.bf16.msra.mxu1 %v2670_v63  ;;  %v980_v29 = vmax.f32 %v792_v14, 0.0  ;;  %v982_v43 = vmax.f32 %v905_v15, 0.0 }
 0x2da   :  { %v983_v9 = vmax.f32 %v794_v22, 0.0  ;;  %v985_v30 = vmax.f32 %v907_v56, 0.0  ;;  %1578 = vmatprep.subr.bf16.mxu1 %v2675_v8  ;;  %v2730_v56 = vld [vmem:[#allocation10 + $0x70] sm:$0xff]   ;;  %2355 = vmatpush3.bf16.msra.mxu0 %v2729_v18 }
 0x2db   :  { %v984_v24 = vmax.f32 %v796_v13, 0.0  ;;  %v986_v31 = vmax.f32 %v909_v28, 0.0  ;;  %v2682_v28 = vld [vmem:[#allocation8 + $0x140] ss:$8 sps:$4 sm:$0xff]   ;;  %2356 = vmatprep.subr.bf16.mxu0 %v2730_v56 }
 0x2dc   :  { %v1039_v45 = vpack.c.bf16 %v983_v9, %v979_v36  ;;  %v3320_v46 = vpack.c.bf16 %v985_v30, %v981_v37  ;;  %v2687_v30 = vld [vmem:[#allocation8 + $0x154] ss:$8 sps:$4 sm:$0xff]  }
 0x2dd   :  { %v1040_v3 = vpack.c.bf16 %v984_v24, %v980_v29  ;;  %v3322_v48 = vpack.c.bf16 %v986_v31, %v982_v43  ;;  %1579 = vmatpush1.bf16.msra.mxu1 %v2673_v21  ;;  %v799_v1 = vpop.f32.mrb[8].mxu1  ;;  %v912_v49 = vpop.f32.mrb[24].mxu0  ;;  %v2731_v31 = vld [vmem:[#allocation10 + $0x30] sm:$0xff]  }
 0x2de   :  { %v800_v11 = vadd.f32 %v799_v1, %v3290_v27  ;;  %v913_v40 = vadd.f32 %v912_v49, %v3292_v39  ;;  %v801_v51 = vpop.f32.mrb[9].mxu1  ;;  %v914_v52 = vpop.f32.mrb[25].mxu0  ;;  %1580 = vmatprep.subr.bf16.mxu1 %v2678_v23  ;;  %2357 = vmatpush3.bf16.msra.mxu0 %v2731_v31 }
 0x2df   :  { %v802_v12 = vadd.f32 %v801_v51, %v3296_v42  ;;  %v915_v41 = vadd.f32 %v914_v52, %v3298_v10  ;;  %v803_v33 = vpop.f32.mrb[10].mxu1  ;;  %v916_v34 = vpop.f32.mrb[26].mxu0  ;;  %1505 = vmatprep.mubr.bf16.mxu1 %v1040_v3 }
 0x2e0   :  { %v804_v54 = vadd.f32 %v803_v33, %v3290_v27  ;;  %v917_v55 = vadd.f32 %v916_v34, %v3292_v39  ;;  %v805_v57 = vpop.f32.mrb[11].mxu1  ;;  %v918_v58 = vpop.f32.mrb[27].mxu0  ;;  %1506 = vmatmul.mubr.bf16.gmra.mrb[36].mxu1 %v1039_v45  ;;  %v987_v63 = vmax.f32 %v800_v11, 0.0  ;;  %v989_v4 = vmax.f32 %v913_v40, 0.0 }
 0x2e1   :  { %v806_v61 = vadd.f32 %v805_v57, %v3296_v42  ;;  %v919_v59 = vadd.f32 %v918_v58, %v3298_v10  ;;  %1581 = vmatpush1.bf16.msra.mxu1 %v2676_v50  ;;  %v988_v8 = vmax.f32 %v802_v12, 0.0  ;;  %v990_v14 = vmax.f32 %v915_v41, 0.0  ;;  %v2685_v50 = vld [vmem:[#allocation8 + $0x150] ss:$8 sps:$4 sm:$0xff]  }
 0x2e2   :  { %v991_v5 = vmax.f32 %v804_v54, 0.0  ;;  %v993_v6 = vmax.f32 %v917_v55, 0.0  ;;  %1582 = vmatprep.subr.bf16.mxu1 %v2681_v32  ;;  %v2690_v32 = vld [vmem:[#allocation8 + $0x164] ss:$8 sps:$4 sm:$0xff]  }
 0x2e3   :  { %v992_v15 = vmax.f32 %v806_v61, 0.0  ;;  %v994_v17 = vmax.f32 %v919_v59, 0.0  ;;  %v2688_v61 = vld [vmem:[#allocation8 + $0x160] ss:$8 sps:$4 sm:$0xff]  }
 0x2e4   :  { %v1043_v19 = vpack.c.bf16 %v991_v5, %v987_v63  ;;  %v3332_v22 = vpack.c.bf16 %v993_v6, %v989_v4  ;;  %v2693_v5 = vld [vmem:[#allocation8 + $0x174] ss:$8 sps:$4 sm:$0xff]  }
 0x2e5   :  { %v1044_v25 = vpack.c.bf16 %v992_v15, %v988_v8  ;;  %v3334_v26 = vpack.c.bf16 %v994_v17, %v990_v14  ;;  %1583 = vmatpush1.bf16.msra.mxu1 %v2679_v62  ;;  %v809_v20 = vpop.f32.mrb[12].mxu1  ;;  %v922_v13 = vpop.f32.mrb[28].mxu0 }
 0x2e6   :  { %v810_v21 = vadd.f32 %v809_v20, %v3290_v27  ;;  %v923_v36 = vadd.f32 %v922_v13, %v3292_v39  ;;  %v811_v37 = vpop.f32.mrb[13].mxu1  ;;  %v924_v9 = vpop.f32.mrb[29].mxu0  ;;  %1584 = vmatprep.subr.bf16.mxu1 %v2684_v7  ;;  %v2691_v20 = vld [vmem:[#allocation8 + $0x170] ss:$8 sps:$4 sm:$0xff]  }
 0x2e7   :  { %v812_v23 = vadd.f32 %v811_v37, %v3296_v42  ;;  %v925_v29 = vadd.f32 %v924_v9, %v3298_v10  ;;  %v813_v43 = vpop.f32.mrb[14].mxu1  ;;  %v926_v24 = vpop.f32.mrb[30].mxu0  ;;  %1515 = vmatprep.mubr.bf16.mxu1 %v1044_v25  ;;  %v2696_v37 = vld [vmem:[#allocation8 + $0x184] ss:$8 sps:$4 sm:$0xff]  }
 0x2e8   :  { %v814_v44 = vadd.f32 %v813_v43, %v3290_v27  ;;  %v927_v45 = vadd.f32 %v926_v24, %v3292_v39  ;;  %v815_v47 = vpop.f32.mrb[15].mxu1  ;;  %v928_v3 = vpop.f32.mrb[31].mxu0  ;;  %1516 = vmatmul.mubr.bf16.gmra.mrb[40].mxu1 %v1043_v19  ;;  %v995_v11 = vmax.f32 %v810_v21, 0.0  ;;  %v997_v40 = vmax.f32 %v923_v36, 0.0 }
 0x2e9   :  { %v816_v1 = vadd.f32 %v815_v47, %v3296_v42  ;;  %v929_v49 = vadd.f32 %v928_v3, %v3298_v10  ;;  %1585 = vmatpush1.bf16.msra.mxu1 %v2682_v28  ;;  %v996_v12 = vmax.f32 %v812_v23, 0.0  ;;  %v998_v41 = vmax.f32 %v925_v29, 0.0  ;;  %v2694_v3 = vld [vmem:[#allocation8 + $0x180] ss:$8 sps:$4 sm:$0xff]  }
 0x2ea   :  { %v999_v51 = vmax.f32 %v814_v44, 0.0  ;;  %v1001_v52 = vmax.f32 %v927_v45, 0.0  ;;  %1586 = vmatprep.subr.bf16.mxu1 %v2687_v30 }
 0x2eb   :  { %v1000_v33 = vmax.f32 %v816_v1, 0.0  ;;  %v1002_v34 = vmax.f32 %v929_v49, 0.0 }
 0x2ec   :  { %v1047_v53 = vpack.c.bf16 %v999_v51, %v995_v11  ;;  %v3344_v54 = vpack.c.bf16 %v1001_v52, %v997_v40  ;;  %v2699_v40 = vld [vmem:[#allocation8 + $0x194] ss:$8 sps:$4 sm:$0xff]  }
 0x2ed   :  { %v1048_v55 = vpack.c.bf16 %v1000_v33, %v996_v12  ;;  %v3346_v57 = vpack.c.bf16 %v1002_v34, %v998_v41  ;;  %1587 = vmatpush1.bf16.msra.mxu1 %v2685_v50  ;;  %v819_v58 = vpop.f32.mrb[16].mxu1  ;;  %v932_v2 = vpop.f32.mrb[32].mxu0 }
 0x2ee   :  { %v820_v59 = vadd.f32 %v819_v58, %v3290_v27  ;;  %v933_v62 = vadd.f32 %v932_v2, %v3292_v39  ;;  %v821_v63 = vpop.f32.mrb[17].mxu1  ;;  %v934_v4 = vpop.f32.mrb[33].mxu0  ;;  %1588 = vmatprep.subr.bf16.mxu1 %v2690_v32  ;;  %v2697_v2 = vld [vmem:[#allocation8 + $0x190] ss:$8 sps:$4 sm:$0xff]  }
 0x2ef   :  { %v822_v6 = vadd.f32 %v821_v63, %v3296_v42  ;;  %v935_v7 = vadd.f32 %v934_v4, %v3298_v10  ;;  %v823_v8 = vpop.f32.mrb[18].mxu1  ;;  %v936_v14 = vpop.f32.mrb[34].mxu0  ;;  %1525 = vmatprep.mubr.bf16.mxu1 %v1048_v55  ;;  %v2702_v4 = vld [vmem:[#allocation8 + $0x1a4] ss:$8 sps:$4 sm:$0xff]  }
 0x2f0   :  { %v824_v15 = vadd.f32 %v823_v8, %v3290_v27  ;;  %v937_v17 = vadd.f32 %v936_v14, %v3292_v39  ;;  %v825_v18 = vpop.f32.mrb[19].mxu1  ;;  %v938_v19 = vpop.f32.mrb[35].mxu0  ;;  %1526 = vmatmul.mubr.bf16.gmra.mrb[44].mxu1 %v1047_v53  ;;  %v1003_v13 = vmax.f32 %v820_v59, 0.0  ;;  %v1005_v28 = vmax.f32 %v933_v62, 0.0 }
 0x2f1   :  { %v826_v56 = vadd.f32 %v825_v18, %v3296_v42  ;;  %v939_v25 = vadd.f32 %v938_v19, %v3298_v10  ;;  %1589 = vmatpush1.bf16.msra.mxu1 %v2688_v61  ;;  %v1004_v9 = vmax.f32 %v822_v6, 0.0  ;;  %v1006_v30 = vmax.f32 %v935_v7, 0.0 }
 0x2f2   :  { %v1007_v21 = vmax.f32 %v824_v15, 0.0  ;;  %v1009_v36 = vmax.f32 %v937_v17, 0.0  ;;  %1590 = vmatprep.subr.bf16.mxu1 %v2693_v5 }
 0x2f3   :  { %v1008_v23 = vmax.f32 %v826_v56, 0.0  ;;  %v1010_v29 = vmax.f32 %v939_v25, 0.0  ;;  %v2700_v25 = vld [vmem:[#allocation8 + $0x1a0] ss:$8 sps:$4 sm:$0xff]  }
 0x2f4   :  { %v1051_v43 = vpack.c.bf16 %v1007_v21, %v1003_v13  ;;  %v3356_v24 = vpack.c.bf16 %v1009_v36, %v1005_v28  ;;  %v2705_v36 = vld [vmem:[#allocation8 + $0x1b4] ss:$8 sps:$4 sm:$0xff]  }
 0x2f5   :  { %v1052_v31 = vpack.c.bf16 %v1008_v23, %v1004_v9  ;;  %v3358_v44 = vpack.c.bf16 %v1010_v29, %v1006_v30  ;;  %1591 = vmatpush1.bf16.msra.mxu1 %v2691_v20  ;;  %v829_v45 = vpop.f32.mrb[20].mxu1  ;;  %v942_v47 = vpop.f32.mrb[36].mxu0 }
 0x2f6   :  { %v830_v1 = vadd.f32 %v829_v45, %v3290_v27  ;;  %v943_v49 = vadd.f32 %v942_v47, %v3292_v39  ;;  %v831_v50 = vpop.f32.mrb[21].mxu1  ;;  %v944_v11 = vpop.f32.mrb[37].mxu0  ;;  %1592 = vmatprep.subr.bf16.mxu1 %v2696_v37 }
 0x2f7   :  { %v832_v51 = vadd.f32 %v831_v50, %v3296_v42  ;;  %v945_v52 = vadd.f32 %v944_v11, %v3298_v10  ;;  %v833_v32 = vpop.f32.mrb[22].mxu1  ;;  %v946_v12 = vpop.f32.mrb[38].mxu0  ;;  %1535 = vmatprep.mubr.bf16.mxu1 %v1052_v31 }
 0x2f8   :  { %v834_v41 = vadd.f32 %v833_v32, %v3290_v27  ;;  %v947_v33 = vadd.f32 %v946_v12, %v3292_v39  ;;  %v835_v34 = vpop.f32.mrb[23].mxu1  ;;  %v948_v53 = vpop.f32.mrb[39].mxu0  ;;  %1536 = vmatmul.mubr.bf16.gmra.mrb[48].mxu1 %v1051_v43  ;;  %v1011_v61 = vmax.f32 %v830_v1, 0.0  ;;  %v1013_v59 = vmax.f32 %v943_v49, 0.0  ;;  %v2703_v1 = vld [vmem:[#allocation8 + $0x1b0] ss:$8 sps:$4 sm:$0xff]  }
 0x2f9   :  { %v836_v55 = vadd.f32 %v835_v34, %v3296_v42  ;;  %v949_v58 = vadd.f32 %v948_v53, %v3298_v10  ;;  %1593 = vmatpush1.bf16.msra.mxu1 %v2694_v3  ;;  %v1012_v5 = vmax.f32 %v832_v51, 0.0  ;;  %v1014_v6 = vmax.f32 %v945_v52, 0.0  ;;  %v2708_v51 = vld [vmem:[#allocation8 + $0x1c4] ss:$8 sps:$4 sm:$0xff]  }
 0x2fa   :  { %v1015_v62 = vmax.f32 %v834_v41, 0.0  ;;  %v1017_v63 = vmax.f32 %v947_v33, 0.0  ;;  %1594 = vmatprep.subr.bf16.mxu1 %v2699_v40 }
 0x2fb   :  { %v1016_v7 = vmax.f32 %v836_v55, 0.0  ;;  %v1018_v8 = vmax.f32 %v949_v58, 0.0 }
 0x2fc   :  { %v1055_v14 = vpack.c.bf16 %v1015_v62, %v1011_v61  ;;  %v3368_v15 = vpack.c.bf16 %v1017_v63, %v1013_v59  ;;  %v2706_v61 = vld [vmem:[#allocation8 + $0x1c0] ss:$8 sps:$4 sm:$0xff]  }
 0x2fd   :  { %v1056_v17 = vpack.c.bf16 %v1016_v7, %v1012_v5  ;;  %v3370_v18 = vpack.c.bf16 %v1018_v8, %v1014_v6  ;;  %1595 = vmatpush1.bf16.msra.mxu1 %v2697_v2  ;;  %v839_v19 = vpop.f32.mrb[24].mxu1  ;;  %v952_v56 = vpop.f32.mrb[40].mxu0  ;;  %v2711_v5 = vld [vmem:[#allocation8 + $0x1d4] ss:$8 sps:$4 sm:$0xff]  }
 0x2fe   :  { %v840_v20 = vadd.f32 %v839_v19, %v3290_v27  ;;  %v953_v13 = vadd.f32 %v952_v56, %v3292_v39  ;;  %v841_v28 = vpop.f32.mrb[25].mxu1  ;;  %v954_v21 = vpop.f32.mrb[41].mxu0  ;;  %1596 = vmatprep.subr.bf16.mxu1 %v2702_v4 }
 0x2ff   :  { %v842_v37 = vadd.f32 %v841_v28, %v3296_v42  ;;  %v955_v9 = vadd.f32 %v954_v21, %v3298_v10  ;;  %v843_v30 = vpop.f32.mrb[26].mxu1  ;;  %v956_v23 = vpop.f32.mrb[42].mxu0  ;;  %1545 = vmatprep.mubr.bf16.mxu1 %v1056_v17  ;;  %v2709_v28 = vld [vmem:[#allocation8 + $0x1d0] ss:$8 sps:$4 sm:$0xff]  }
 0x300   :  { %v844_v29 = vadd.f32 %v843_v30, %v3290_v27  ;;  %v957_v43 = vadd.f32 %v956_v23, %v3292_v39  ;;  %v845_v31 = vpop.f32.mrb[27].mxu1  ;;  %v958_v45 = vpop.f32.mrb[43].mxu0  ;;  %1546 = vmatmul.mubr.bf16.gmra.mrb[52].mxu1 %v1055_v14  ;;  %v1019_v49 = vmax.f32 %v840_v20, 0.0  ;;  %v1021_v50 = vmax.f32 %v953_v13, 0.0  ;;  %v2714_v30 = vld [vmem:[#allocation8 + $0x1e4] ss:$8 sps:$4 sm:$0xff]  }
 0x301   :  { %v846_v47 = vadd.f32 %v845_v31, %v3296_v42  ;;  %v959_v3 = vadd.f32 %v958_v45, %v3298_v10  ;;  %1597 = vmatpush1.bf16.msra.mxu1 %v2700_v25  ;;  %v1020_v52 = vmax.f32 %v842_v37, 0.0  ;;  %v1022_v32 = vmax.f32 %v955_v9, 0.0 }
 0x302   :  { %v1023_v11 = vmax.f32 %v844_v29, 0.0  ;;  %v1025_v40 = vmax.f32 %v957_v43, 0.0  ;;  %1598 = vmatprep.subr.bf16.mxu1 %v2705_v36 }
 0x303   :  { %v1024_v12 = vmax.f32 %v846_v47, 0.0  ;;  %v1026_v41 = vmax.f32 %v959_v3, 0.0  ;;  %v2715_v3 = vld [vmem:[#allocation8 + $0x1f0] ss:$8 sps:$4 sm:$0xff]  }
 0x304   :  { %v1059_v33 = vpack.c.bf16 %v1023_v11, %v1019_v49  ;;  %v3380_v34 = vpack.c.bf16 %v1025_v40, %v1021_v50 }
 0x305   :  { %v1060_v53 = vpack.c.bf16 %v1024_v12, %v1020_v52  ;;  %v1062_v55 = vpack.c.bf16 %v1026_v41, %v1022_v32  ;;  %1599 = vmatpush1.bf16.msra.mxu1 %v2703_v1  ;;  %v849_v58 = vpop.f32.mrb[28].mxu1  ;;  %v962_v2 = vpop.f32.mrb[44].mxu0  ;;  %v2735_v12 = vld [vmem:[#allocation11 + $0x8] sm:$0xff]  }
 0x306   :  { %v850_v59 = vadd.f32 %v849_v58, %v3290_v27  ;;  %v963_v62 = vadd.f32 %v962_v2, %v3292_v39  ;;  %v851_v63 = vpop.f32.mrb[29].mxu1  ;;  %v964_v4 = vpop.f32.mrb[45].mxu0  ;;  %1600 = vmatprep.subr.bf16.mxu1 %v2708_v51 }
 0x307   :  { %v852_v6 = vadd.f32 %v851_v63, %v3296_v42  ;;  %v965_v7 = vadd.f32 %v964_v4, %v3298_v10  ;;  %v853_v8 = vpop.f32.mrb[30].mxu1  ;;  %v966_v14 = vpop.f32.mrb[46].mxu0  ;;  %1555 = vmatprep.mubr.bf16.mxu1 %v1060_v53 }
 0x308   :  { %v854_v17 = vadd.f32 %v853_v8, %v3290_v27  ;;  %v967_v19 = vadd.f32 %v966_v14, %v3292_v39  ;;  %v855_v56 = vpop.f32.mrb[31].mxu1  ;;  %v968_v25 = vpop.f32.mrb[47].mxu0  ;;  %1556 = vmatmul.mubr.bf16.gmra.mrb[56].mxu1 %v1059_v33  ;;  %v1027_v21 = vmax.f32 %v850_v59, 0.0  ;;  %v1029_v36 = vmax.f32 %v963_v62, 0.0 }
 0x309   :  { %v856_v20 = vadd.f32 %v855_v56, %v3296_v42  ;;  %v969_v13 = vadd.f32 %v968_v25, %v3298_v10  ;;  %1601 = vmatpush1.bf16.msra.mxu1 %v2706_v61  ;;  %v1028_v23 = vmax.f32 %v852_v6, 0.0  ;;  %v1030_v29 = vmax.f32 %v965_v7, 0.0  ;;  %v2712_v42 = vld [vmem:[#allocation8 + $0x1e0] ss:$8 sps:$4 sm:$0xff]   ;;  %v2717_v10 = vld [vmem:[#allocation8 + $0x1f4] ss:$8 sps:$4 sm:$0xff]  }
 0x30a   :  { %v1031_v37 = vmax.f32 %v854_v17, 0.0  ;;  %v1033_v9 = vmax.f32 %v967_v19, 0.0  ;;  %1602 = vmatprep.subr.bf16.mxu1 %v2711_v5  ;;  %v2736_v61 = vld [vmem:[#allocation11 + $0x10] sm:$0xff]  }
 0x30b   :  { %v1032_v27 = vmax.f32 %v856_v20, 0.0  ;;  %v1034_v43 = vmax.f32 %v969_v13, 0.0 }
 0x30c   :  { %v1063_v39 = vpack.c.bf16 %v1031_v37, %v1027_v21  ;;  %v1065_v31 = vpack.c.bf16 %v1033_v9, %v1029_v36 }
 0x30d   :  { %v1064_v45 = vpack.c.bf16 %v1032_v27, %v1028_v23  ;;  %v1066_v47 = vpack.c.bf16 %v1034_v43, %v1030_v29  ;;  %1603 = vmatpush1.bf16.msra.mxu1 %v2709_v28 }
 0x30e   :  { %1604 = vmatprep.subr.bf16.mxu1 %v2714_v30 }
 0x30f   :  { %1565 = vmatprep.mubr.bf16.mxu1 %v1064_v45 }
 0x310   :  { %1566 = vmatmul.mubr.bf16.gmra.mrb[60].mxu1 %v1063_v39 }
 0x311   :  { %1605 = vmatpush1.bf16.msra.mxu1 %v2712_v42  ;;  %1608 = vmatprep.mubr.bf16.mxu1 %v3310_v0  ;;  %v2733_v0 = vld [vmem:[#allocation10 + $0x38] sm:$0xff]  }
 0x312   :  { %1606 = vmatprep.subr.bf16.mxu1 %v2717_v10 }
 0x315   :  { %1607 = vmatpush1.bf16.msra.mxu1 %v2715_v3 }
 0x318   :  { %1609 = vmatmul.mubr.bf16.vlgmr.msra.gmra.mrb[32].mxu1 %v3308_v60  ;;  %v2732_v60 = vld [vmem:[#allocation10 + $0x78] sm:$0xff]  }
 0x319   :  { %1618 = vmatprep.mubr.bf16.mxu1 %v3322_v48  ;;  %2358 = vmatprep.subr.bf16.mxu0 %v2732_v60  ;;  %v1131_v48 = vld [vmem:[%s3491_s6] sm:$0x3] }
 0x31a   :  { %2359 = vmatpush3.bf16.msra.mxu0 %v2733_v0 }
 0x320   :  { %1619 = vmatmul.mubr.bf16.gmra.mrb[36].mxu1 %v3320_v46  ;;  %v2734_v46 = vld [vmem:[#allocation11] sm:$0xff]  }
 0x321   :  { %1628 = vmatprep.mubr.bf16.mxu1 %v3334_v26  ;;  %2456 = vmatprep.subr.bf16.mxu0 %v2734_v46  ;;  %v3412_v26 = vrot.slane %v1131_v48, %v571_v38 }
 0x328   :  { %1629 = vmatmul.mubr.bf16.gmra.mrb[40].mxu1 %v3332_v22  ;;  %v3408_v22 = vrot.slane %v1131_v48, %v567_v35 }
 0x329   :  { %1638 = vmatprep.mubr.bf16.mxu1 %v3346_v57 }
 0x330   :  { %1639 = vmatmul.mubr.bf16.gmra.mrb[44].mxu1 %v3344_v54 }
 0x331   :  { %1648 = vmatprep.mubr.bf16.mxu1 %v3358_v44 }
 0x338   :  { %1649 = vmatmul.mubr.bf16.gmra.mrb[48].mxu1 %v3356_v24 }
 0x339   :  { %1658 = vmatprep.mubr.bf16.mxu1 %v3370_v18 }
 0x340   :  { %1659 = vmatmul.mubr.bf16.gmra.mrb[52].mxu1 %v3368_v15 }
 0x341   :  { %1668 = vmatprep.mubr.bf16.mxu1 %v1062_v55 }
 0x348   :  { %1669 = vmatmul.mubr.bf16.gmra.mrb[56].mxu1 %v3380_v34 }
 0x349   :  { %1678 = vmatprep.mubr.bf16.mxu1 %v1066_v47 }
 0x350   :  { %1679 = vmatmul.mubr.bf16.gmra.mrb[60].mxu1 %v1065_v31 }
 0x3eb   :  { %v1610_v54 = vpop.f32.mrb[32].mxu1 }
 0x3ec   :  { %v2488_v57 = vadd.f32 %v1610_v54, %v3408_v22  ;;  %v1612_v24 = vpop.f32.mrb[33].mxu1 }
 0x3ed   :  { %v2489_v44 = vadd.f32 %v1612_v24, %v3412_v26  ;;  %v1614_v15 = vpop.f32.mrb[34].mxu1 }
 0x3ee   :  { %v2490_v18 = vadd.f32 %v1614_v15, %v3408_v22  ;;  %v1616_v1 = vpop.f32.mrb[35].mxu1  ;;  %v1689_v50 = vmax.f32 %v2488_v57, 0.0 }
 0x3ef   :  { %v2491_v49 = vadd.f32 %v1616_v1, %v3412_v26  ;;  %v1690_v35 = vmax.f32 %v2489_v44, 0.0 }
 0x3f0   :  { %v1691_v11 = vmax.f32 %v2490_v18, 0.0 }
 0x3f1   :  { %v1692_v40 = vmax.f32 %v2491_v49, 0.0 }
 0x3f2   :  { %v1721_v51 = vpack.c.bf16 %v1691_v11, %v1689_v50 }
 0x3f3   :  { %v1722_v16 = vpack.c.bf16 %v1692_v40, %v1690_v35  ;;  %v1620_v38 = vpop.f32.mrb[36].mxu1 }
 0x3f4   :  { %v2492_v52 = vadd.f32 %v1620_v38, %v3408_v22  ;;  %v1622_v32 = vpop.f32.mrb[37].mxu1 }
 0x3f5   :  { %v2493_v41 = vadd.f32 %v1622_v32, %v3412_v26  ;;  %v1624_v33 = vpop.f32.mrb[38].mxu1  ;;  %1904 = vmatprep.mubr.bf16.mxu0 %v1722_v16 }
 0x3f6   :  { %v2494_v34 = vadd.f32 %v1624_v33, %v3408_v22  ;;  %v1626_v53 = vpop.f32.mrb[39].mxu1  ;;  %1905 = vmatmul.mubr.bf16.vlgmr.msra.gmra.mrb[48].mxu0 %v1721_v51  ;;  %v1693_v58 = vmax.f32 %v2492_v52, 0.0 }
 0x3f7   :  { %v2495_v55 = vadd.f32 %v1626_v53, %v3412_v26  ;;  %2457 = vmatpush3.bf16.msra.mxu0 %v2734_v46  ;;  %v1694_v59 = vmax.f32 %v2493_v41, 0.0 }
 0x3f8   :  { %v1695_v2 = vmax.f32 %v2494_v34, 0.0  ;;  %2458 = vmatprep.subr.bf16.mxu0 %v2735_v12 }
 0x3f9   :  { %v1696_v62 = vmax.f32 %v2495_v55, 0.0 }
 0x3fa   :  { %v1723_v63 = vpack.c.bf16 %v1695_v2, %v1693_v58 }
 0x3fb   :  { %v1724_v4 = vpack.c.bf16 %v1696_v62, %v1694_v59  ;;  %v1630_v5 = vpop.f32.mrb[40].mxu1  ;;  %2459 = vmatpush3.bf16.msra.mxu0 %v2735_v12 }
 0x3fc   :  { %v2496_v6 = vadd.f32 %v1630_v5, %v3408_v22  ;;  %v1632_v7 = vpop.f32.mrb[41].mxu1  ;;  %2460 = vmatprep.subr.bf16.mxu0 %v2736_v61 }
 0x3fd   :  { %v2497_v8 = vadd.f32 %v1632_v7, %v3412_v26  ;;  %v1634_v14 = vpop.f32.mrb[42].mxu1  ;;  %1912 = vmatprep.mubr.bf16.mxu0 %v1724_v4 }
 0x3fe   :  { %v2498_v17 = vadd.f32 %v1634_v14, %v3408_v22  ;;  %v1636_v19 = vpop.f32.mrb[43].mxu1  ;;  %1913 = vmatmul.mubr.bf16.gmra.mrb[52].mxu0 %v1723_v63  ;;  %v1697_v25 = vmax.f32 %v2496_v6, 0.0 }
 0x3ff   :  { %v2499_v56 = vadd.f32 %v1636_v19, %v3412_v26  ;;  %2461 = vmatpush3.bf16.msra.mxu0 %v2736_v61  ;;  %v1698_v13 = vmax.f32 %v2497_v8, 0.0 }
 0x400   :  { %v1699_v20 = vmax.f32 %v2498_v17, 0.0 }
 0x401   :  { %v1700_v28 = vmax.f32 %v2499_v56, 0.0 }
 0x402   :  { %v1725_v21 = vpack.c.bf16 %v1699_v20, %v1697_v25 }
 0x403   :  { %v1726_v36 = vpack.c.bf16 %v1700_v28, %v1698_v13  ;;  %v1640_v37 = vpop.f32.mrb[44].mxu1 }
 0x404   :  { %v2500_v9 = vadd.f32 %v1640_v37, %v3408_v22  ;;  %v1642_v30 = vpop.f32.mrb[45].mxu1 }
 0x405   :  { %v2501_v23 = vadd.f32 %v1642_v30, %v3412_v26  ;;  %v1644_v29 = vpop.f32.mrb[46].mxu1  ;;  %1920 = vmatprep.mubr.bf16.mxu0 %v1726_v36 }
 0x406   :  { %v2502_v27 = vadd.f32 %v1644_v29, %v3408_v22  ;;  %v1646_v43 = vpop.f32.mrb[47].mxu1  ;;  %1921 = vmatmul.mubr.bf16.gmra.mrb[56].mxu0 %v1725_v21  ;;  %v1701_v31 = vmax.f32 %v2500_v9, 0.0 }
 0x407   :  { %v2503_v39 = vadd.f32 %v1646_v43, %v3412_v26  ;;  %v1702_v47 = vmax.f32 %v2501_v23, 0.0 }
 0x408   :  { %v1703_v45 = vmax.f32 %v2502_v27, 0.0 }
 0x409   :  { %v1704_v42 = vmax.f32 %v2503_v39, 0.0 }
 0x40a   :  { %v1727_v10 = vpack.c.bf16 %v1703_v45, %v1701_v31  ;;  %v2737_v31 = vld [vmem:[#allocation11 + $0x18] sm:$0xff]   ;;  %v2738_v45 = vld [vmem:[#allocation11 + $0x20] sm:$0xff]  }
 0x40b   :  { %v1728_v3 = vpack.c.bf16 %v1704_v42, %v1702_v47  ;;  %v1650_v60 = vpop.f32.mrb[48].mxu1  ;;  %2462 = vmatprep.subr.bf16.mxu0 %v2737_v31  ;;  %v2739_v47 = vld [vmem:[#allocation11 + $0x28] sm:$0xff]  }
 0x40c   :  { %v2504_v0 = vadd.f32 %v1650_v60, %v3408_v22  ;;  %v1652_v46 = vpop.f32.mrb[49].mxu1  ;;  %2463 = vmatpush3.bf16.msra.mxu0 %v2737_v31 }
 0x40d   :  { %v2505_v48 = vadd.f32 %v1652_v46, %v3412_v26  ;;  %v1654_v54 = vpop.f32.mrb[50].mxu1  ;;  %1928 = vmatprep.mubr.bf16.mxu0 %v1728_v3  ;;  %2464 = vmatprep.subr.bf16.mxu0 %v2738_v45 }
 0x40e   :  { %v2506_v57 = vadd.f32 %v1654_v54, %v3408_v22  ;;  %v1656_v24 = vpop.f32.mrb[51].mxu1  ;;  %1929 = vmatmul.mubr.bf16.gmra.mrb[60].mxu0 %v1727_v10  ;;  %v1705_v15 = vmax.f32 %v2504_v0, 0.0  ;;  %v3449_v10 = vld [vmem:[%s3493_s8] ss:$0 sm:$0xff] }
 0x40f   :  { %v2507_v44 = vadd.f32 %v1656_v24, %v3412_v26  ;;  %v1706_v1 = vmax.f32 %v2505_v48, 0.0 }
 0x410   :  { %v1707_v18 = vmax.f32 %v2506_v57, 0.0  ;;  %2465 = vmatpush3.bf16.msra.mxu0 %v2738_v45 }
 0x411   :  { %v1708_v49 = vmax.f32 %v2507_v44, 0.0  ;;  %2466 = vmatprep.subr.bf16.mxu0 %v2739_v47 }
 0x412   :  { %v1729_v50 = vpack.c.bf16 %v1707_v18, %v1705_v15 }
 0x413   :  { %v1730_v11 = vpack.c.bf16 %v1708_v49, %v1706_v1  ;;  %v1660_v35 = vpop.f32.mrb[52].mxu1 }
 0x414   :  { %v2508_v40 = vadd.f32 %v1660_v35, %v3408_v22  ;;  %v1662_v51 = vpop.f32.mrb[53].mxu1  ;;  %2467 = vmatpush3.bf16.msra.mxu0 %v2739_v47 }
 0x415   :  { %v2509_v16 = vadd.f32 %v1662_v51, %v3412_v26  ;;  %v1664_v38 = vpop.f32.mrb[54].mxu1  ;;  %1936 = vmatprep.mubr.bf16.mxu0 %v1730_v11 }
 0x416   :  { %v2510_v52 = vadd.f32 %v1664_v38, %v3408_v22  ;;  %v1666_v32 = vpop.f32.mrb[55].mxu1  ;;  %1937 = vmatmul.mubr.bf16.gmra.mrb[64].mxu0 %v1729_v50  ;;  %v1709_v41 = vmax.f32 %v2508_v40, 0.0 }
 0x417   :  { %v2511_v12 = vadd.f32 %v1666_v32, %v3412_v26  ;;  %v1710_v34 = vmax.f32 %v2509_v16, 0.0 }
 0x418   :  { %v1711_v33 = vmax.f32 %v2510_v52, 0.0 }
 0x419   :  { %v1712_v53 = vmax.f32 %v2511_v12, 0.0 }
 0x41a   :  { %v1731_v55 = vpack.c.bf16 %v1711_v33, %v1709_v41 }
 0x41b   :  { %v1732_v58 = vpack.c.bf16 %v1712_v53, %v1710_v34  ;;  %v1670_v2 = vpop.f32.mrb[56].mxu1 }
 0x41c   :  { %v2512_v61 = vadd.f32 %v1670_v2, %v3408_v22  ;;  %v1672_v59 = vpop.f32.mrb[57].mxu1 }
 0x41d   :  { %v2513_v62 = vadd.f32 %v1672_v59, %v3412_v26  ;;  %v1674_v63 = vpop.f32.mrb[58].mxu1  ;;  %1944 = vmatprep.mubr.bf16.mxu0 %v1732_v58 }
 0x41e   :  { %v2514_v4 = vadd.f32 %v1674_v63, %v3408_v22  ;;  %v1676_v5 = vpop.f32.mrb[59].mxu1  ;;  %1945 = vmatmul.mubr.bf16.gmra.mrb[68].mxu0 %v1731_v55  ;;  %v1713_v7 = vmax.f32 %v2512_v61, 0.0 }
 0x41f   :  { %v2515_v6 = vadd.f32 %v1676_v5, %v3412_v26  ;;  %v1714_v14 = vmax.f32 %v2513_v62, 0.0 }
 0x420   :  { %v1715_v8 = vmax.f32 %v2514_v4, 0.0 }
 0x421   :  { %v1716_v17 = vmax.f32 %v2515_v6, 0.0 }
 0x422   :  { %v1733_v19 = vpack.c.bf16 %v1715_v8, %v1713_v7 }
 0x423   :  { %v1734_v56 = vpack.c.bf16 %v1716_v17, %v1714_v14  ;;  %v1680_v25 = vpop.f32.mrb[60].mxu1 }
 0x424   :  { %v2516_v20 = vadd.f32 %v1680_v25, %v3408_v22  ;;  %v1682_v13 = vpop.f32.mrb[61].mxu1 }
 0x425   :  { %v2517_v28 = vadd.f32 %v1682_v13, %v3412_v26  ;;  %v1684_v21 = vpop.f32.mrb[62].mxu1  ;;  %1952 = vmatprep.mubr.bf16.mxu0 %v1734_v56 }
 0x426   :  { %v2518_v36 = vadd.f32 %v1684_v21, %v3408_v22  ;;  %v1686_v37 = vpop.f32.mrb[63].mxu1  ;;  %1953 = vmatmul.mubr.bf16.gmra.mrb[72].mxu0 %v1733_v19  ;;  %v1717_v30 = vmax.f32 %v2516_v20, 0.0  ;;  %v2740_v22 = vld [vmem:[#allocation11 + $0x30] sm:$0xff]  }
 0x427   :  { %v2519_v9 = vadd.f32 %v1686_v37, %v3412_v26  ;;  %v1718_v29 = vmax.f32 %v2517_v28, 0.0  ;;  %2468 = vmatprep.subr.bf16.mxu0 %v2740_v22  ;;  %v2741_v26 = vld [vmem:[#allocation11 + $0x38] sm:$0xff]  }
 0x428   :  { %v1719_v23 = vmax.f32 %v2518_v36, 0.0  ;;  %2469 = vmatpush3.bf16.msra.mxu0 %v2740_v22 }
 0x429   :  { %v1720_v27 = vmax.f32 %v2519_v9, 0.0  ;;  %2470 = vmatprep.subr.bf16.mxu0 %v2741_v26 }
 0x42a   :  { %v1735_v43 = vpack.c.bf16 %v1719_v23, %v1717_v30 }
 0x42b   :  { %v1736_v39 = vpack.c.bf16 %v1720_v27, %v1718_v29 }
 0x42c   :  { %2471 = vmatpush3.bf16.msra.mxu0 %v2741_v26 }
 0x42d   :  { %1960 = vmatprep.mubr.bf16.mxu0 %v1736_v39 }
 0x42e   :  { %1961 = vmatmul.mubr.bf16.gmra.mrb[76].mxu0 %v1735_v43 }
 0x4c9   :  { %v2360_v42 = vpop.f32.mrb[48].mxu0 }
 0x4ca   :  { %v2361_v3 = vpop.f32.mrb[49].mxu0 }
 0x4cb   :  { %v2362_v60 = vadd.f32 %v2361_v3, %v2360_v42  ;;  %v2363_v0 = vpop.f32.mrb[50].mxu0 }
 0x4cc   :  { %v2364_v46 = vpop.f32.mrb[51].mxu0 }
 0x4cd   :  { %v1907_v48 = vadd.f32 %v2362_v60, %v3449_v10  ;;  %v2365_v54 = vadd.f32 %v2364_v46, %v2363_v0 }
 0x4cf   :  { %v1910_v57 = vadd.f32 %v2365_v54, %v3449_v10  ;;  %v1969_v24 = vmax.f32 %v1907_v48, 0.0 }
 0x4d1   :  { %v1970_v44 = vmax.f32 %v1910_v57, 0.0  ;;  %v2366_v15 = vpop.f32.mrb[52].mxu0 }
 0x4d2   :  { %v2367_v18 = vpop.f32.mrb[53].mxu0 }
 0x4d3   :  { %v2368_v1 = vadd.f32 %v2367_v18, %v2366_v15  ;;  %v2369_v49 = vpop.f32.mrb[54].mxu0  ;;  %v1985_v50 = vpack.c.bf16 %v1970_v44, %v1969_v24 }
 0x4d4   :  { %v2370_v11 = vpop.f32.mrb[55].mxu0 }
 0x4d5   :  { %v1915_v35 = vadd.f32 %v2368_v1, %v3449_v10  ;;  %v2371_v40 = vadd.f32 %v2370_v11, %v2369_v49  ;;  %2472 = vmatprep.mubr.bf16.mxu0 %v1985_v50 }
 0x4d7   :  { %v1918_v51 = vadd.f32 %v2371_v40, %v3449_v10  ;;  %v1971_v16 = vmax.f32 %v1915_v35, 0.0 }
 0x4d9   :  { %v1972_v38 = vmax.f32 %v1918_v51, 0.0  ;;  %v2372_v52 = vpop.f32.mrb[56].mxu0 }
 0x4da   :  { %v2373_v32 = vpop.f32.mrb[57].mxu0 }
 0x4db   :  { %v1986_v12 = vpack.c.bf16 %v1972_v38, %v1971_v16  ;;  %v2374_v41 = vadd.f32 %v2373_v32, %v2372_v52  ;;  %v2375_v33 = vpop.f32.mrb[58].mxu0 }
 0x4dc   :  { %v2376_v34 = vpop.f32.mrb[59].mxu0 }
 0x4dd   :  { %v1923_v53 = vadd.f32 %v2374_v41, %v3449_v10  ;;  %v2377_v55 = vadd.f32 %v2376_v34, %v2375_v33  ;;  %2473 = vmatmul.mubr.bf16.vlgmr.msra.gmra.mrb[80].mxu0 %v1986_v12  ;;  %v2319_v33 = vld [vmem:[%s3495_s10] ss:$0 sm:$0xff]  ;;  %s2951_s10 = smov [#allocation13]  }
 0x4de   :  { %s2182_s25 = sshll.u32 %s2951_s10, 4  ;;  %s2183_s25 = int_to_ptr.vmem [resolvable:$true] %s2182_s25 }
 0x4df   :  { %v1926_v58 = vadd.f32 %v2377_v55, %v3449_v10  ;;  %v1973_v2 = vmax.f32 %v1923_v53, 0.0  ;;  %s2906_s26 = scalar_lea.vmem %s2183_s25, 2048  ;;  %p2911_p7 = scmp.lt.s32.totalorder %s2183_s25, %s2183_s25 }
 0x4e0   :  { %p2907_p6 = scmp.ne.s32.totalorder %s2183_s25, %s2906_s26  ;;  %p2912_p8 = scmp.lt.s32.totalorder %s2906_s26, %s2906_s26 }
 0x4e1   :  { %v1974_v61 = vmax.f32 %v1926_v58, 0.0  ;;  %v2378_v59 = vpop.f32.mrb[60].mxu0 }
 0x4e2   :  { %v2379_v62 = vpop.f32.mrb[61].mxu0  ;;  %p2913_p9 = por %p2912_p8, %p2911_p7 }
 0x4e3   :  { %v2380_v63 = vadd.f32 %v2379_v62, %v2378_v59  ;;  %v2381_v4 = vpop.f32.mrb[62].mxu0  ;;  %v1987_v5 = vpack.c.bf16 %v1974_v61, %v1973_v2 }
 0x4e4   :  { %v2382_v6 = vpop.f32.mrb[63].mxu0  ;;  %p2914_p10 = pnand %p2913_p9, %p2907_p6 }
 0x4e5   :  { %v1931_v7 = vadd.f32 %v2380_v63, %v3449_v10  ;;  %v2383_v8 = vadd.f32 %v2382_v6, %v2381_v4  ;;  %2476 = vmatprep.mubr.bf16.mxu0 %v1987_v5 }
 0x4e7   :  { %v1934_v14 = vadd.f32 %v2383_v8, %v3449_v10  ;;  %v1975_v17 = vmax.f32 %v1931_v7, 0.0 }
 0x4e9   :  { %v1976_v19 = vmax.f32 %v1934_v14, 0.0  ;;  %v2384_v56 = vpop.f32.mrb[64].mxu0 }
 0x4ea   :  { %v2385_v25 = vpop.f32.mrb[65].mxu0 }
 0x4eb   :  { %v2386_v20 = vadd.f32 %v2385_v25, %v2384_v56  ;;  %v2387_v13 = vpop.f32.mrb[66].mxu0  ;;  %v1988_v28 = vpack.c.bf16 %v1976_v19, %v1975_v17 }
 0x4ec   :  { %v2388_v21 = vpop.f32.mrb[67].mxu0 }
 0x4ed   :  { %v1939_v36 = vadd.f32 %v2386_v20, %v3449_v10  ;;  %v2389_v37 = vadd.f32 %v2388_v21, %v2387_v13  ;;  %2477 = vmatmul.mubr.bf16.gmra.mrb[84].mxu0 %v1988_v28 }
 0x4ef   :  { %v1942_v9 = vadd.f32 %v2389_v37, %v3449_v10  ;;  %v1977_v30 = vmax.f32 %v1939_v36, 0.0 }
 0x4f1   :  { %v1978_v23 = vmax.f32 %v1942_v9, 0.0  ;;  %v2390_v29 = vpop.f32.mrb[68].mxu0 }
 0x4f2   :  { %v2391_v27 = vpop.f32.mrb[69].mxu0 }
 0x4f3   :  { %v2392_v43 = vadd.f32 %v2391_v27, %v2390_v29  ;;  %v2393_v39 = vpop.f32.mrb[70].mxu0  ;;  %v1989_v31 = vpack.c.bf16 %v1978_v23, %v1977_v30 }
 0x4f4   :  { %v2394_v45 = vpop.f32.mrb[71].mxu0 }
 0x4f5   :  { %v1947_v47 = vadd.f32 %v2392_v43, %v3449_v10  ;;  %v2395_v22 = vadd.f32 %v2394_v45, %v2393_v39  ;;  %2480 = vmatprep.mubr.bf16.mxu0 %v1989_v31 }
 0x4f7   :  { %v1950_v26 = vadd.f32 %v2395_v22, %v3449_v10  ;;  %v1979_v42 = vmax.f32 %v1947_v47, 0.0 }
 0x4f9   :  { %v1980_v3 = vmax.f32 %v1950_v26, 0.0  ;;  %v2396_v60 = vpop.f32.mrb[72].mxu0 }
 0x4fa   :  { %v2397_v0 = vpop.f32.mrb[73].mxu0 }
 0x4fb   :  { %v2398_v46 = vadd.f32 %v2397_v0, %v2396_v60  ;;  %v2399_v48 = vpop.f32.mrb[74].mxu0  ;;  %v1990_v54 = vpack.c.bf16 %v1980_v3, %v1979_v42 }
 0x4fc   :  { %v2400_v57 = vpop.f32.mrb[75].mxu0 }
 0x4fd   :  { %v1955_v24 = vadd.f32 %v2398_v46, %v3449_v10  ;;  %v2401_v44 = vadd.f32 %v2400_v57, %v2399_v48  ;;  %2481 = vmatmul.mubr.bf16.gmra.mrb[88].mxu0 %v1990_v54 }
 0x4ff   :  { %v1958_v15 = vadd.f32 %v2401_v44, %v3449_v10  ;;  %v1981_v18 = vmax.f32 %v1955_v24, 0.0 }
 0x501   :  { %v1982_v1 = vmax.f32 %v1958_v15, 0.0  ;;  %v2402_v49 = vpop.f32.mrb[76].mxu0 }
 0x502   :  { %v2403_v50 = vpop.f32.mrb[77].mxu0 }
 0x503   :  { %v2404_v11 = vadd.f32 %v2403_v50, %v2402_v49  ;;  %v2405_v35 = vpop.f32.mrb[78].mxu0  ;;  %v1991_v40 = vpack.c.bf16 %v1982_v1, %v1981_v18 }
 0x504   :  { %v2406_v51 = vpop.f32.mrb[79].mxu0 }
 0x505   :  { %v1963_v16 = vadd.f32 %v2404_v11, %v3449_v10  ;;  %v2407_v38 = vadd.f32 %v2406_v51, %v2405_v35  ;;  %2484 = vmatprep.mubr.bf16.mxu0 %v1991_v40 }
 0x507   :  { %v1966_v52 = vadd.f32 %v2407_v38, %v3449_v10  ;;  %v1983_v32 = vmax.f32 %v1963_v16, 0.0 }
 0x509   :  { %v1984_v12 = vmax.f32 %v1966_v52, 0.0 }
 0x50b   :  { %v1992_v41 = vpack.c.bf16 %v1984_v12, %v1983_v32 }
 0x50d   :  { %2485 = vmatmul.mubr.bf16.gmra.mrb[92].mxu0 %v1992_v41 }
 0x5b0   :  { %v2474_v34 = vpop.f32.mrb[80].mxu0 }
 0x5b1   :  { %v2107_v53 = vadd.f32 %v2474_v34, %v2319_v33  ;;  %v2098_v55 = vpop.f32.mrb[81].mxu0 }
 0x5b2   :  { %v2099_v58 = vadd.f32 %v2319_v33, %v2098_v55  ;;  %v2475_v2 = vpop.f32.mrb[82].mxu0 }
 0x5b3   :  { %2163 = vst [vmem:[#allocation13 + $0x10] sm:$0xff] %v2107_v53  ;;  %v2110_v61 = vadd.f32 %v2475_v2, %v2319_v33  ;;  %v2101_v59 = vpop.f32.mrb[83].mxu0 }
 0x5b4   :  { %2161 = vst [vmem:[#allocation13] sm:$0xff] %v2099_v58  ;;  %v2102_v62 = vadd.f32 %v2319_v33, %v2101_v59 }
 0x5b5   :  { %2164 = vst [vmem:[#allocation13 + $0x18] sm:$0xff] %v2110_v61 }
 0x5b6   :  { %2162 = vst [vmem:[#allocation13 + $0x8] sm:$0xff] %v2102_v62 }
 0x5c0   :  { %v2478_v10 = vpop.f32.mrb[84].mxu0 }
 0x5c1   :  { %v2123_v63 = vadd.f32 %v2478_v10, %v2319_v33  ;;  %v2114_v4 = vpop.f32.mrb[85].mxu0 }
 0x5c2   :  { %v2115_v5 = vadd.f32 %v2319_v33, %v2114_v4  ;;  %v2479_v6 = vpop.f32.mrb[86].mxu0 }
 0x5c3   :  { %2167 = vst [vmem:[#allocation13 + $0x30] sm:$0xff] %v2123_v63  ;;  %v2126_v7 = vadd.f32 %v2479_v6, %v2319_v33  ;;  %v2117_v8 = vpop.f32.mrb[87].mxu0 }
 0x5c4   :  { %2165 = vst [vmem:[#allocation13 + $0x20] sm:$0xff] %v2115_v5  ;;  %v2118_v14 = vadd.f32 %v2319_v33, %v2117_v8 }
 0x5c5   :  { %2168 = vst [vmem:[#allocation13 + $0x38] sm:$0xff] %v2126_v7 }
 0x5c6   :  { %2166 = vst [vmem:[#allocation13 + $0x28] sm:$0xff] %v2118_v14 }
 0x5d0   :  { %v2482_v17 = vpop.f32.mrb[88].mxu0 }
 0x5d1   :  { %v2139_v19 = vadd.f32 %v2482_v17, %v2319_v33  ;;  %v2130_v56 = vpop.f32.mrb[89].mxu0 }
 0x5d2   :  { %v2131_v25 = vadd.f32 %v2319_v33, %v2130_v56  ;;  %v2483_v20 = vpop.f32.mrb[90].mxu0 }
 0x5d3   :  { %2171 = vst [vmem:[#allocation13 + $0x50] sm:$0xff] %v2139_v19  ;;  %v2142_v13 = vadd.f32 %v2483_v20, %v2319_v33  ;;  %v2133_v28 = vpop.f32.mrb[91].mxu0 }
 0x5d4   :  { %2169 = vst [vmem:[#allocation13 + $0x40] sm:$0xff] %v2131_v25  ;;  %v2134_v21 = vadd.f32 %v2319_v33, %v2133_v28 }
 0x5d5   :  { %2172 = vst [vmem:[#allocation13 + $0x58] sm:$0xff] %v2142_v13 }
 0x5d6   :  { %2170 = vst [vmem:[#allocation13 + $0x48] sm:$0xff] %v2134_v21 }
 0x5e0   :  { %v2486_v36 = vpop.f32.mrb[92].mxu0 }
 0x5e1   :  { %v2155_v37 = vadd.f32 %v2486_v36, %v2319_v33  ;;  %v2146_v9 = vpop.f32.mrb[93].mxu0 }
 0x5e2   :  { %v2147_v30 = vadd.f32 %v2319_v33, %v2146_v9  ;;  %v2487_v23 = vpop.f32.mrb[94].mxu0 }
 0x5e3   :  { %2175 = vst [vmem:[#allocation13 + $0x70] sm:$0xff] %v2155_v37  ;;  %v2158_v29 = vadd.f32 %v2487_v23, %v2319_v33  ;;  %v2149_v27 = vpop.f32.mrb[95].mxu0 }
 0x5e4   :  { %2173 = vst [vmem:[#allocation13 + $0x60] sm:$0xff] %v2147_v30  ;;  %v2150_v43 = vadd.f32 %v2319_v33, %v2149_v27 }
 0x5e5   :  { %2176 = vst [vmem:[#allocation13 + $0x78] sm:$0xff] %v2158_v29 }
 0x5e6   :  { %2174 = vst [vmem:[#allocation13 + $0x68] sm:$0xff] %v2150_v43 }
 0x5e7   :  { %2917 = shalt.err (!%p2914_p10)
}
 0x5e8   :  { %s2918_s3 = scalar_lea.hbm %s3496_s11, 2048 }
 0x5e9   :  { %p2919_p11 = scmp.ne.s32.totalorder %s3496_s11, %s2918_s3  ;;  %p2922_p12 = scmp.lt.u32.totalorder %s2918_s3, %s3496_s11 }
 0x5eb   :  { %p2924_p13 = pnand %p2922_p12, %p2919_p11 }
 0x5ed   :  { %2927 = shalt.err (!%p2924_p13)
}
 0x5ee   :  { %2188 = dma.vmem_to_hbm [thread:$0]  %s2183_s25, 2048, %s3496_s11, [#allocation4], %s2943_s18, %s2943_s18, %s2944_s24  }
 0x5ef   :  { %2936 = dma.done.wait [#allocation4], 2048  }
 0x5f0   :  { %2937 = vsyncadd [#allocation4], 4294965248 }
 0x5f1   :  { %2192 = vsyncpa [#allocation3], 1 }
 0x5f2   :  { %2193 = vsyncpa [#allocation6], 1 }
 0x5f3   :  { %2194 = vsyncpa [#allocation9], 1 }
 0x5f4   :  { %2195 = vsyncpa [#allocation12], 1 }
 0x5f5   :  { %2196 = vsyncpa [#allocation4], 1 }

</bundles_post_ra>
